<compile_context>
chip_gen: v5e
topology: v5e:2x2
jax: 0.10.0
libtpu: 0.0.40
codegen_flags: <defaults>
</compile_context>

<pallas_src>
import numpy as np

import jax
import jax.numpy as jnp
from jax.experimental import pallas as pl
from jax.experimental.pallas import tpu as pltpu


# ---------------------------------------------------------------------------
# Constant 0/1 selection matrices (built with numpy at trace time).
# ---------------------------------------------------------------------------
def _conv_select(h_in, w_in, k):
    """(k*k, h_out*w_out, h_in*w_in): tap t=kh*k+kw selects row (ho+kh)*w_in+(wo+kw)."""
    h_out, w_out = h_in - k + 1, w_in - k + 1
    s = np.zeros((k * k, h_out * w_out, h_in * w_in), np.float32)
    for kh in range(k):
        for kw in range(k):
            t = kh * k + kw
            for ho in range(h_out):
                for wo in range(w_out):
                    s[t, ho * w_out + wo, (ho + kh) * w_in + (wo + kw)] = 1.0
    return s


def _pool_select(h_in, w_in):
    """(4, h_out*w_out, h_in*w_in): offset d=dh*2+dw selects row (2hp+dh)*w_in+(2wp+dw)."""
    h_out, w_out = h_in // 2, w_in // 2
    m = np.zeros((4, h_out * w_out, h_in * w_in), np.float32)
    for dh in range(2):
        for dw in range(2):
            d = dh * 2 + dw
            for hp in range(h_out):
                for wp in range(w_out):
                    m[d, hp * w_out + wp, (2 * hp + dh) * w_in + (2 * wp + dw)] = 1.0
    return m


# ---------------------------------------------------------------------------
# Fused Pallas kernel: the whole CNNModule forward for one batch sample.
# ---------------------------------------------------------------------------
def _fused_cnn_kernel(x_ref, s2_ref, mp_ref, s3_ref,
                      w1_ref, b1_ref, w2_ref, b2_ref, w3_ref, b3_ref,
                      w4_ref, b4_ref, f1w_ref, f1b_ref, f2w_ref, f2b_ref,
                      f3w_ref, f3b_ref, o_ref):
    f32 = jnp.float32

    x = x_ref[0]                                                    # (H*W, Cin)

    # Conv2d(Cin, bc, 1x1) + ReLU : plain channel matmul.
    y1 = jnp.dot(x, w1_ref[...], preferred_element_type=f32) + b1_ref[...]
    y1 = jnp.maximum(y1, 0.0)                                       # (121, bc)

    # Conv2d(bc, 2bc, 3x3) + ReLU : per-tap spatial gather via constant 0/1
    # selection matmul (MXU), then tap weight matmul, summed over 9 taps.
    acc2 = jnp.zeros((s2_ref.shape[1], w2_ref.shape[-1]), f32)      # (81, 2bc)
    for t in range(s2_ref.shape[0]):
        tap = jnp.dot(s2_ref[t], y1, preferred_element_type=f32)    # (81, bc)
        acc2 = acc2 + jnp.dot(tap, w2_ref[t], preferred_element_type=f32)
    y2 = jnp.maximum(acc2 + b2_ref[...], 0.0)                       # (81, 2bc)

    # MaxPool2d(2, 2): four window-offset gathers + elementwise max.
    p00 = jnp.dot(mp_ref[0], y2, preferred_element_type=f32)
    p01 = jnp.dot(mp_ref[1], y2, preferred_element_type=f32)
    p10 = jnp.dot(mp_ref[2], y2, preferred_element_type=f32)
    p11 = jnp.dot(mp_ref[3], y2, preferred_element_type=f32)
    pooled = jnp.maximum(jnp.maximum(p00, p01), jnp.maximum(p10, p11))  # (16, 2bc)
    # Dropout(p=0.5): eval-mode identity.

    # Conv2d(2bc, 2bc, 3x3) + ReLU.
    acc3 = jnp.zeros((s3_ref.shape[1], w3_ref.shape[-1]), f32)      # (4, 2bc)
    for t in range(s3_ref.shape[0]):
        tap = jnp.dot(s3_ref[t], pooled, preferred_element_type=f32)
        acc3 = acc3 + jnp.dot(tap, w3_ref[t], preferred_element_type=f32)
    y3 = jnp.maximum(acc3 + b3_ref[...], 0.0)                       # (4, 2bc)

    # Conv2d(2bc, bc, 1x1), no activation.
    y4 = jnp.dot(y3, w4_ref[...], preferred_element_type=f32) + b4_ref[...]  # (4, bc)

    # Flatten(1) in PyTorch NCHW order, folded into fc1's weight:
    # f1w[s] holds the fc1 columns belonging to spatial position s.
    h = jnp.dot(y4[0:1, :], f1w_ref[0], preferred_element_type=f32)
    for s in range(1, f1w_ref.shape[0]):
        h = h + jnp.dot(y4[s:s + 1, :], f1w_ref[s], preferred_element_type=f32)
    h = jnp.maximum(h + f1b_ref[...], 0.0)                          # (1, bc)
    # Dropout: identity.

    h = jnp.dot(h, f2w_ref[...], preferred_element_type=f32) + f2b_ref[...]
    h = jnp.maximum(h, 0.0)                                         # (1, bc//2)
    # Dropout: identity.

    h = jnp.dot(h, f3w_ref[...], preferred_element_type=f32) + f3b_ref[...]
    h = jnp.maximum(h, 0.0)                                         # (1, out)

    # nn.Softmax() on a 2-D input -> softmax over the feature axis.
    h = h - jnp.max(h, axis=-1, keepdims=True)
    e = jnp.exp(h)
    inv = pl.reciprocal(jnp.sum(e, axis=-1, keepdims=True), approx=True)
    o_ref[0] = (e * inv).astype(o_ref.dtype)


def _const_spec(a):
    # Whole array as one block, same block for every grid step (stays resident).
    return pl.BlockSpec(a.shape, lambda b, _nd=a.ndim: (0,) * _nd)


# ---------------------------------------------------------------------------
# Wrapper: one-time layout prep + single pallas_call.
# ---------------------------------------------------------------------------
def cnn_forward(x_nchw, p):
    B, cin, H, W = x_nchw.shape
    bc = p["c1_w"].shape[0]
    out_n = p["f3_w"].shape[0]

    h2, w2 = H - 2, W - 2                 # after conv2 (3x3 VALID)
    hp, wp = h2 // 2, w2 // 2             # after maxpool(2,2)
    h3, w3 = hp - 2, wp - 2               # after conv3 (3x3 VALID); conv4 is 1x1
    sp3 = h3 * w3

    # Input layout: NCHW -> (B, H*W, Cin), channels on the lane axis (glue).
    x = jnp.transpose(x_nchw, (0, 2, 3, 1)).astype(jnp.float32).reshape(B, H * W, cin)

    # One-time weight re-layouts (PyTorch OIHW / (out,in) -> lane-major).
    w1 = jnp.transpose(p["c1_w"][:, :, 0, 0])                            # (cin, bc)
    b1 = p["c1_b"].reshape(1, -1)
    w2t = jnp.transpose(p["c2_w"], (2, 3, 1, 0)).reshape(9, bc, 2 * bc)  # (9, bc, 2bc)
    b2 = p["c2_b"].reshape(1, -1)
    w3t = jnp.transpose(p["c3_w"], (2, 3, 1, 0)).reshape(9, 2 * bc, 2 * bc)
    b3 = p["c3_b"].reshape(1, -1)
    w4 = jnp.transpose(p["c4_w"][:, :, 0, 0])                            # (2bc, bc)
    b4 = p["c4_b"].reshape(1, -1)
    # Fold the NCHW Flatten(1) permutation into fc1's weight: (sp3, bc_in, bc_out).
    f1w = jnp.transpose(p["f1_w"].reshape(bc, bc, sp3), (2, 1, 0))
    f1b = p["f1_b"].reshape(1, -1)
    f2w = jnp.transpose(p["f2_w"])                                       # (bc, bc//2)
    f2b = p["f2_b"].reshape(1, -1)
    f3w = jnp.transpose(p["f3_w"])                                       # (bc//2, out)
    f3b = p["f3_b"].reshape(1, -1)

    # Constant selection matrices (trace-time numpy -> baked constants).
    s2 = jnp.asarray(_conv_select(H, W, 3))       # (9, h2*w2, H*W)
    mp = jnp.asarray(_pool_select(h2, w2))        # (4, hp*wp, h2*w2)
    s3 = jnp.asarray(_conv_select(hp, wp, 3))     # (9, sp3, hp*wp)

    consts = (s2, mp, s3, w1, b1, w2t, b2, w3t, b3, w4, b4,
              f1w, f1b, f2w, f2b, f3w, f3b)

    out = pl.pallas_call(
        _fused_cnn_kernel,
        out_shape=jax.ShapeDtypeStruct((B, 1, out_n), jnp.float32),
        grid=(B,),
        in_specs=[pl.BlockSpec((1, H * W, cin), lambda b: (b, 0, 0))]
                 + [_const_spec(a) for a in consts],
        out_specs=pl.BlockSpec((1, 1, out_n), lambda b: (b, 0, 0)),
        compiler_params=pltpu.CompilerParams(dimension_semantics=("parallel",)),
    )(x, *consts)
    return out[:, 0, :]


# ---------------------------------------------------------------------------
# Deterministic synthetic weights in PyTorch conventions (OIHW / (out,in)).
# ---------------------------------------------------------------------------
def init_params(key, input_channels=16, output_size=3, base_channels=16):
    ks = jax.random.split(key, 14)

    def w(k, shape, scale=0.1):
        return (scale * jax.random.normal(k, shape)).astype(jnp.float32)

    bc = base_channels
    p = {}
    p["c1_w"] = w(ks[0], (bc, input_channels, 1, 1))
    p["c1_b"] = w(ks[1], (bc,))
    p["c2_w"] = w(ks[2], (2 * bc, bc, 3, 3))
    p["c2_b"] = w(ks[3], (2 * bc,))
    p["c3_w"] = w(ks[4], (2 * bc, 2 * bc, 3, 3))
    p["c3_b"] = w(ks[5], (2 * bc,))
    p["c4_w"] = w(ks[6], (bc, 2 * bc, 1, 1))
    p["c4_b"] = w(ks[7], (bc,))
    inn = 2 * 2 * bc                       # int((11-2)/2 - 2)^2 * bc = 64
    p["f1_w"] = w(ks[8], (bc, inn))
    p["f1_b"] = w(ks[9], (bc,))
    p["f2_w"] = w(ks[10], (bc // 2, bc))
    p["f2_b"] = w(ks[11], (bc // 2,))
    p["f3_w"] = w(ks[12], (output_size, bc // 2))
    p["f3_b"] = w(ks[13], (output_size,))
    return p


# ---------------------------------------------------------------------------
# Pure-JAX reference (eval-mode dropout), for a tolerance check.
# ---------------------------------------------------------------------------
def _conv_ref(x, w, b):
    y = jax.lax.conv_general_dilated(
        x, w, window_strides=(1, 1), padding="VALID",
        dimension_numbers=("NCHW", "OIHW", "NCHW"))
    return y + b.reshape(1, -1, 1, 1)


def cnn_reference(x, p):
    y = jax.nn.relu(_conv_ref(x, p["c1_w"], p["c1_b"]))
    y = jax.nn.relu(_conv_ref(y, p["c2_w"], p["c2_b"]))
    y = jax.lax.reduce_window(y, -jnp.inf, jax.lax.max,
                              (1, 1, 2, 2), (1, 1, 2, 2), "VALID")
    y = jax.nn.relu(_conv_ref(y, p["c3_w"], p["c3_b"]))
    y = _conv_ref(y, p["c4_w"], p["c4_b"])
    h = y.reshape(y.shape[0], -1)
    h = jax.nn.relu(h @ p["f1_w"].T + p["f1_b"])
    h = jax.nn.relu(h @ p["f2_w"].T + p["f2_b"])
    h = jax.nn.relu(h @ p["f3_w"].T + p["f3_b"])
    return jax.nn.softmax(h, axis=-1)


if __name__ == "__main__":
    key = jax.random.PRNGKey(0)
    pkey, xkey = jax.random.split(key)
    params = init_params(pkey)

    # n = patch_size*2 + 1 = 11  ->  input (B, C_in, 11, 11), NCHW like PyTorch.
    x = jax.random.normal(xkey, (2, 16, 11, 11), dtype=jnp.float32)

    out = jax.jit(cnn_forward)(x, params)
    out = jax.block_until_ready(out)

    assert out.shape == (2, 3), out.shape
    assert bool(jnp.all(jnp.isfinite(out)))
    # each row is a softmax -> sums to ~1 (approx reciprocal in the kernel)
    assert bool(jnp.allclose(jnp.sum(out, axis=-1), 1.0, atol=2e-2))
    ref = cnn_reference(x, params)
    assert bool(jnp.allclose(out, ref, atol=3e-2, rtol=3e-2)), (
        float(jnp.max(jnp.abs(out - ref))))
    print("KERNEL_OK")
</pallas_src>

<mosaic_0001>
module attributes {stable_mosaic.version = 11 : i64} {
  func.func @_fused_cnn_kernel(%arg0: i32, %arg1: memref<1x121x16xf32, #tpu.memory_space<vmem>>, %arg2: memref<9x81x121xf32, #tpu.memory_space<vmem>>, %arg3: memref<4x16x81xf32, #tpu.memory_space<vmem>>, %arg4: memref<9x4x16xf32, #tpu.memory_space<vmem>>, %arg5: memref<16x16xf32, #tpu.memory_space<vmem>>, %arg6: memref<1x16xf32, #tpu.memory_space<vmem>>, %arg7: memref<9x16x32xf32, #tpu.memory_space<vmem>>, %arg8: memref<1x32xf32, #tpu.memory_space<vmem>>, %arg9: memref<9x32x32xf32, #tpu.memory_space<vmem>>, %arg10: memref<1x32xf32, #tpu.memory_space<vmem>>, %arg11: memref<32x16xf32, #tpu.memory_space<vmem>>, %arg12: memref<1x16xf32, #tpu.memory_space<vmem>>, %arg13: memref<4x16x16xf32, #tpu.memory_space<vmem>>, %arg14: memref<1x16xf32, #tpu.memory_space<vmem>>, %arg15: memref<16x8xf32, #tpu.memory_space<vmem>>, %arg16: memref<1x8xf32, #tpu.memory_space<vmem>>, %arg17: memref<8x3xf32, #tpu.memory_space<vmem>>, %arg18: memref<1x3xf32, #tpu.memory_space<vmem>>, %arg19: memref<1x1x3xf32, #tpu.memory_space<vmem>>) attributes {dimension_semantics = [#tpu.dimension_semantics<parallel>], iteration_bounds = array<i64: 2>, scalar_prefetch = 0 : i64, scratch_operands = 0 : i64, tpu.core_type = #tpu.core_type<tc>, window_params = [{transform_indices = @transform_0, window_bounds = array<i64: 1, 121, 16>}, {pipeline_mode = #tpu.pipeline_mode<synchronous>, transform_indices = @transform_1, window_bounds = array<i64: 9, 81, 121>}, {pipeline_mode = #tpu.pipeline_mode<synchronous>, transform_indices = @transform_2, window_bounds = array<i64: 4, 16, 81>}, {pipeline_mode = #tpu.pipeline_mode<synchronous>, transform_indices = @transform_3, window_bounds = array<i64: 9, 4, 16>}, {pipeline_mode = #tpu.pipeline_mode<synchronous>, transform_indices = @transform_4, window_bounds = array<i64: 16, 16>}, {pipeline_mode = #tpu.pipeline_mode<synchronous>, transform_indices = @transform_5, window_bounds = array<i64: 1, 16>}, {pipeline_mode = #tpu.pipeline_mode<synchronous>, transform_indices = @transform_6, window_bounds = array<i64: 9, 16, 32>}, {pipeline_mode = #tpu.pipeline_mode<synchronous>, transform_indices = @transform_7, window_bounds = array<i64: 1, 32>}, {pipeline_mode = #tpu.pipeline_mode<synchronous>, transform_indices = @transform_8, window_bounds = array<i64: 9, 32, 32>}, {pipeline_mode = #tpu.pipeline_mode<synchronous>, transform_indices = @transform_9, window_bounds = array<i64: 1, 32>}, {pipeline_mode = #tpu.pipeline_mode<synchronous>, transform_indices = @transform_10, window_bounds = array<i64: 32, 16>}, {pipeline_mode = #tpu.pipeline_mode<synchronous>, transform_indices = @transform_11, window_bounds = array<i64: 1, 16>}, {pipeline_mode = #tpu.pipeline_mode<synchronous>, transform_indices = @transform_12, window_bounds = array<i64: 4, 16, 16>}, {pipeline_mode = #tpu.pipeline_mode<synchronous>, transform_indices = @transform_13, window_bounds = array<i64: 1, 16>}, {pipeline_mode = #tpu.pipeline_mode<synchronous>, transform_indices = @transform_14, window_bounds = array<i64: 16, 8>}, {pipeline_mode = #tpu.pipeline_mode<synchronous>, transform_indices = @transform_15, window_bounds = array<i64: 1, 8>}, {pipeline_mode = #tpu.pipeline_mode<synchronous>, transform_indices = @transform_16, window_bounds = array<i64: 8, 3>}, {pipeline_mode = #tpu.pipeline_mode<synchronous>, transform_indices = @transform_17, window_bounds = array<i64: 1, 3>}, {transform_indices = @transform_18, window_bounds = array<i64: 1, 1, 3>}]} {
    %c0 = arith.constant 0 : index
    %c0_0 = arith.constant 0 : index
    %c0_1 = arith.constant 0 : index
    %0 = vector.load %arg1[%c0, %c0_0, %c0_1] : memref<1x121x16xf32, #tpu.memory_space<vmem>>, vector<1x121x16xf32>
    %1 = vector.shape_cast %0 : vector<1x121x16xf32> to vector<121x16xf32>
    %c0_2 = arith.constant 0 : index
    %c0_3 = arith.constant 0 : index
    %2 = vector.load %arg5[%c0_2, %c0_3] : memref<16x16xf32, #tpu.memory_space<vmem>>, vector<16x16xf32>
    %cst = arith.constant dense<0.000000e+00> : vector<121x16xf32>
    %3 = tpu.matmul %1, %2, %cst {dimension_numbers = #tpu.dot_dimension_numbers<[1], [0], [0], [1], [0, 0, 1, 1], [], []>} : vector<121x16xf32>, vector<16x16xf32>, vector<121x16xf32> -> vector<121x16xf32>
    %c0_4 = arith.constant 0 : index
    %c0_5 = arith.constant 0 : index
    %4 = vector.load %arg6[%c0_4, %c0_5] : memref<1x16xf32, #tpu.memory_space<vmem>>, vector<1x16xf32>
    %5 = vector.broadcast %4 : vector<1x16xf32> to vector<121x16xf32>
    %6 = arith.addf %3, %5 : vector<121x16xf32>
    %cst_6 = arith.constant 0.000000e+00 : f32
    %7 = vector.broadcast %cst_6 : f32 to vector<121x16xf32>
    %8 = arith.maximumf %6, %7 : vector<121x16xf32>
    %cst_7 = arith.constant 0.000000e+00 : f32
    %9 = vector.broadcast %cst_7 : f32 to vector<81x32xf32>
    %c0_8 = arith.constant 0 : index
    %c0_9 = arith.constant 0 : index
    %c0_10 = arith.constant 0 : index
    %10 = vector.load %arg2[%c0_8, %c0_9, %c0_10] : memref<9x81x121xf32, #tpu.memory_space<vmem>>, vector<1x81x121xf32>
    %11 = vector.shape_cast %10 : vector<1x81x121xf32> to vector<81x121xf32>
    %cst_11 = arith.constant dense<0.000000e+00> : vector<81x16xf32>
    %12 = tpu.matmul %11, %8, %cst_11 {dimension_numbers = #tpu.dot_dimension_numbers<[1], [0], [0], [1], [0, 0, 1, 1], [], []>} : vector<81x121xf32>, vector<121x16xf32>, vector<81x16xf32> -> vector<81x16xf32>
    %c0_12 = arith.constant 0 : index
    %c0_13 = arith.constant 0 : index
    %c0_14 = arith.constant 0 : index
    %13 = vector.load %arg7[%c0_12, %c0_13, %c0_14] : memref<9x16x32xf32, #tpu.memory_space<vmem>>, vector<1x16x32xf32>
    %14 = vector.shape_cast %13 : vector<1x16x32xf32> to vector<16x32xf32>
    %cst_15 = arith.constant dense<0.000000e+00> : vector<81x32xf32>
    %15 = tpu.matmul %12, %14, %cst_15 {dimension_numbers = #tpu.dot_dimension_numbers<[1], [0], [0], [1], [0, 0, 1, 1], [], []>} : vector<81x16xf32>, vector<16x32xf32>, vector<81x32xf32> -> vector<81x32xf32>
    %16 = arith.addf %9, %15 : vector<81x32xf32>
    %c1 = arith.constant 1 : index
    %c0_16 = arith.constant 0 : index
    %c0_17 = arith.constant 0 : index
    %17 = vector.load %arg2[%c1, %c0_16, %c0_17] : memref<9x81x121xf32, #tpu.memory_space<vmem>>, vector<1x81x121xf32>
    %18 = vector.shape_cast %17 : vector<1x81x121xf32> to vector<81x121xf32>
    %cst_18 = arith.constant dense<0.000000e+00> : vector<81x16xf32>
    %19 = tpu.matmul %18, %8, %cst_18 {dimension_numbers = #tpu.dot_dimension_numbers<[1], [0], [0], [1], [0, 0, 1, 1], [], []>} : vector<81x121xf32>, vector<121x16xf32>, vector<81x16xf32> -> vector<81x16xf32>
    %c1_19 = arith.constant 1 : index
    %c0_20 = arith.constant 0 : index
    %c0_21 = arith.constant 0 : index
    %20 = vector.load %arg7[%c1_19, %c0_20, %c0_21] : memref<9x16x32xf32, #tpu.memory_space<vmem>>, vector<1x16x32xf32>
    %21 = vector.shape_cast %20 : vector<1x16x32xf32> to vector<16x32xf32>
    %cst_22 = arith.constant dense<0.000000e+00> : vector<81x32xf32>
    %22 = tpu.matmul %19, %21, %cst_22 {dimension_numbers = #tpu.dot_dimension_numbers<[1], [0], [0], [1], [0, 0, 1, 1], [], []>} : vector<81x16xf32>, vector<16x32xf32>, vector<81x32xf32> -> vector<81x32xf32>
    %23 = arith.addf %16, %22 : vector<81x32xf32>
    %c2 = arith.constant 2 : index
    %c0_23 = arith.constant 0 : index
    %c0_24 = arith.constant 0 : index
    %24 = vector.load %arg2[%c2, %c0_23, %c0_24] : memref<9x81x121xf32, #tpu.memory_space<vmem>>, vector<1x81x121xf32>
    %25 = vector.shape_cast %24 : vector<1x81x121xf32> to vector<81x121xf32>
    %cst_25 = arith.constant dense<0.000000e+00> : vector<81x16xf32>
    %26 = tpu.matmul %25, %8, %cst_25 {dimension_numbers = #tpu.dot_dimension_numbers<[1], [0], [0], [1], [0, 0, 1, 1], [], []>} : vector<81x121xf32>, vector<121x16xf32>, vector<81x16xf32> -> vector<81x16xf32>
    %c2_26 = arith.constant 2 : index
    %c0_27 = arith.constant 0 : index
    %c0_28 = arith.constant 0 : index
    %27 = vector.load %arg7[%c2_26, %c0_27, %c0_28] : memref<9x16x32xf32, #tpu.memory_space<vmem>>, vector<1x16x32xf32>
    %28 = vector.shape_cast %27 : vector<1x16x32xf32> to vector<16x32xf32>
    %cst_29 = arith.constant dense<0.000000e+00> : vector<81x32xf32>
    %29 = tpu.matmul %26, %28, %cst_29 {dimension_numbers = #tpu.dot_dimension_numbers<[1], [0], [0], [1], [0, 0, 1, 1], [], []>} : vector<81x16xf32>, vector<16x32xf32>, vector<81x32xf32> -> vector<81x32xf32>
    %30 = arith.addf %23, %29 : vector<81x32xf32>
    %c3 = arith.constant 3 : index
    %c0_30 = arith.constant 0 : index
    %c0_31 = arith.constant 0 : index
    %31 = vector.load %arg2[%c3, %c0_30, %c0_31] : memref<9x81x121xf32, #tpu.memory_space<vmem>>, vector<1x81x121xf32>
    %32 = vector.shape_cast %31 : vector<1x81x121xf32> to vector<81x121xf32>
    %cst_32 = arith.constant dense<0.000000e+00> : vector<81x16xf32>
    %33 = tpu.matmul %32, %8, %cst_32 {dimension_numbers = #tpu.dot_dimension_numbers<[1], [0], [0], [1], [0, 0, 1, 1], [], []>} : vector<81x121xf32>, vector<121x16xf32>, vector<81x16xf32> -> vector<81x16xf32>
    %c3_33 = arith.constant 3 : index
    %c0_34 = arith.constant 0 : index
    %c0_35 = arith.constant 0 : index
    %34 = vector.load %arg7[%c3_33, %c0_34, %c0_35] : memref<9x16x32xf32, #tpu.memory_space<vmem>>, vector<1x16x32xf32>
    %35 = vector.shape_cast %34 : vector<1x16x32xf32> to vector<16x32xf32>
    %cst_36 = arith.constant dense<0.000000e+00> : vector<81x32xf32>
    %36 = tpu.matmul %33, %35, %cst_36 {dimension_numbers = #tpu.dot_dimension_numbers<[1], [0], [0], [1], [0, 0, 1, 1], [], []>} : vector<81x16xf32>, vector<16x32xf32>, vector<81x32xf32> -> vector<81x32xf32>
    %37 = arith.addf %30, %36 : vector<81x32xf32>
    %c4 = arith.constant 4 : index
    %c0_37 = arith.constant 0 : index
    %c0_38 = arith.constant 0 : index
    %38 = vector.load %arg2[%c4, %c0_37, %c0_38] : memref<9x81x121xf32, #tpu.memory_space<vmem>>, vector<1x81x121xf32>
    %39 = vector.shape_cast %38 : vector<1x81x121xf32> to vector<81x121xf32>
    %cst_39 = arith.constant dense<0.000000e+00> : vector<81x16xf32>
    %40 = tpu.matmul %39, %8, %cst_39 {dimension_numbers = #tpu.dot_dimension_numbers<[1], [0], [0], [1], [0, 0, 1, 1], [], []>} : vector<81x121xf32>, vector<121x16xf32>, vector<81x16xf32> -> vector<81x16xf32>
    %c4_40 = arith.constant 4 : index
    %c0_41 = arith.constant 0 : index
    %c0_42 = arith.constant 0 : index
    %41 = vector.load %arg7[%c4_40, %c0_41, %c0_42] : memref<9x16x32xf32, #tpu.memory_space<vmem>>, vector<1x16x32xf32>
    %42 = vector.shape_cast %41 : vector<1x16x32xf32> to vector<16x32xf32>
    %cst_43 = arith.constant dense<0.000000e+00> : vector<81x32xf32>
    %43 = tpu.matmul %40, %42, %cst_43 {dimension_numbers = #tpu.dot_dimension_numbers<[1], [0], [0], [1], [0, 0, 1, 1], [], []>} : vector<81x16xf32>, vector<16x32xf32>, vector<81x32xf32> -> vector<81x32xf32>
    %44 = arith.addf %37, %43 : vector<81x32xf32>
    %c5 = arith.constant 5 : index
    %c0_44 = arith.constant 0 : index
    %c0_45 = arith.constant 0 : index
    %45 = vector.load %arg2[%c5, %c0_44, %c0_45] : memref<9x81x121xf32, #tpu.memory_space<vmem>>, vector<1x81x121xf32>
    %46 = vector.shape_cast %45 : vector<1x81x121xf32> to vector<81x121xf32>
    %cst_46 = arith.constant dense<0.000000e+00> : vector<81x16xf32>
    %47 = tpu.matmul %46, %8, %cst_46 {dimension_numbers = #tpu.dot_dimension_numbers<[1], [0], [0], [1], [0, 0, 1, 1], [], []>} : vector<81x121xf32>, vector<121x16xf32>, vector<81x16xf32> -> vector<81x16xf32>
    %c5_47 = arith.constant 5 : index
    %c0_48 = arith.constant 0 : index
    %c0_49 = arith.constant 0 : index
    %48 = vector.load %arg7[%c5_47, %c0_48, %c0_49] : memref<9x16x32xf32, #tpu.memory_space<vmem>>, vector<1x16x32xf32>
    %49 = vector.shape_cast %48 : vector<1x16x32xf32> to vector<16x32xf32>
    %cst_50 = arith.constant dense<0.000000e+00> : vector<81x32xf32>
    %50 = tpu.matmul %47, %49, %cst_50 {dimension_numbers = #tpu.dot_dimension_numbers<[1], [0], [0], [1], [0, 0, 1, 1], [], []>} : vector<81x16xf32>, vector<16x32xf32>, vector<81x32xf32> -> vector<81x32xf32>
    %51 = arith.addf %44, %50 : vector<81x32xf32>
    %c6 = arith.constant 6 : index
    %c0_51 = arith.constant 0 : index
    %c0_52 = arith.constant 0 : index
    %52 = vector.load %arg2[%c6, %c0_51, %c0_52] : memref<9x81x121xf32, #tpu.memory_space<vmem>>, vector<1x81x121xf32>
    %53 = vector.shape_cast %52 : vector<1x81x121xf32> to vector<81x121xf32>
    %cst_53 = arith.constant dense<0.000000e+00> : vector<81x16xf32>
    %54 = tpu.matmul %53, %8, %cst_53 {dimension_numbers = #tpu.dot_dimension_numbers<[1], [0], [0], [1], [0, 0, 1, 1], [], []>} : vector<81x121xf32>, vector<121x16xf32>, vector<81x16xf32> -> vector<81x16xf32>
    %c6_54 = arith.constant 6 : index
    %c0_55 = arith.constant 0 : index
    %c0_56 = arith.constant 0 : index
    %55 = vector.load %arg7[%c6_54, %c0_55, %c0_56] : memref<9x16x32xf32, #tpu.memory_space<vmem>>, vector<1x16x32xf32>
    %56 = vector.shape_cast %55 : vector<1x16x32xf32> to vector<16x32xf32>
    %cst_57 = arith.constant dense<0.000000e+00> : vector<81x32xf32>
    %57 = tpu.matmul %54, %56, %cst_57 {dimension_numbers = #tpu.dot_dimension_numbers<[1], [0], [0], [1], [0, 0, 1, 1], [], []>} : vector<81x16xf32>, vector<16x32xf32>, vector<81x32xf32> -> vector<81x32xf32>
    %58 = arith.addf %51, %57 : vector<81x32xf32>
    %c7 = arith.constant 7 : index
    %c0_58 = arith.constant 0 : index
    %c0_59 = arith.constant 0 : index
    %59 = vector.load %arg2[%c7, %c0_58, %c0_59] : memref<9x81x121xf32, #tpu.memory_space<vmem>>, vector<1x81x121xf32>
    %60 = vector.shape_cast %59 : vector<1x81x121xf32> to vector<81x121xf32>
    %cst_60 = arith.constant dense<0.000000e+00> : vector<81x16xf32>
    %61 = tpu.matmul %60, %8, %cst_60 {dimension_numbers = #tpu.dot_dimension_numbers<[1], [0], [0], [1], [0, 0, 1, 1], [], []>} : vector<81x121xf32>, vector<121x16xf32>, vector<81x16xf32> -> vector<81x16xf32>
    %c7_61 = arith.constant 7 : index
    %c0_62 = arith.constant 0 : index
    %c0_63 = arith.constant 0 : index
    %62 = vector.load %arg7[%c7_61, %c0_62, %c0_63] : memref<9x16x32xf32, #tpu.memory_space<vmem>>, vector<1x16x32xf32>
    %63 = vector.shape_cast %62 : vector<1x16x32xf32> to vector<16x32xf32>
    %cst_64 = arith.constant dense<0.000000e+00> : vector<81x32xf32>
    %64 = tpu.matmul %61, %63, %cst_64 {dimension_numbers = #tpu.dot_dimension_numbers<[1], [0], [0], [1], [0, 0, 1, 1], [], []>} : vector<81x16xf32>, vector<16x32xf32>, vector<81x32xf32> -> vector<81x32xf32>
    %65 = arith.addf %58, %64 : vector<81x32xf32>
    %c8 = arith.constant 8 : index
    %c0_65 = arith.constant 0 : index
    %c0_66 = arith.constant 0 : index
    %66 = vector.load %arg2[%c8, %c0_65, %c0_66] : memref<9x81x121xf32, #tpu.memory_space<vmem>>, vector<1x81x121xf32>
    %67 = vector.shape_cast %66 : vector<1x81x121xf32> to vector<81x121xf32>
    %cst_67 = arith.constant dense<0.000000e+00> : vector<81x16xf32>
    %68 = tpu.matmul %67, %8, %cst_67 {dimension_numbers = #tpu.dot_dimension_numbers<[1], [0], [0], [1], [0, 0, 1, 1], [], []>} : vector<81x121xf32>, vector<121x16xf32>, vector<81x16xf32> -> vector<81x16xf32>
    %c8_68 = arith.constant 8 : index
    %c0_69 = arith.constant 0 : index
    %c0_70 = arith.constant 0 : index
    %69 = vector.load %arg7[%c8_68, %c0_69, %c0_70] : memref<9x16x32xf32, #tpu.memory_space<vmem>>, vector<1x16x32xf32>
    %70 = vector.shape_cast %69 : vector<1x16x32xf32> to vector<16x32xf32>
    %cst_71 = arith.constant dense<0.000000e+00> : vector<81x32xf32>
    %71 = tpu.matmul %68, %70, %cst_71 {dimension_numbers = #tpu.dot_dimension_numbers<[1], [0], [0], [1], [0, 0, 1, 1], [], []>} : vector<81x16xf32>, vector<16x32xf32>, vector<81x32xf32> -> vector<81x32xf32>
    %72 = arith.addf %65, %71 : vector<81x32xf32>
    %c0_72 = arith.constant 0 : index
    %c0_73 = arith.constant 0 : index
    %73 = vector.load %arg8[%c0_72, %c0_73] : memref<1x32xf32, #tpu.memory_space<vmem>>, vector<1x32xf32>
    %74 = vector.broadcast %73 : vector<1x32xf32> to vector<81x32xf32>
    %75 = arith.addf %72, %74 : vector<81x32xf32>
    %cst_74 = arith.constant 0.000000e+00 : f32
    %76 = vector.broadcast %cst_74 : f32 to vector<81x32xf32>
    %77 = arith.maximumf %75, %76 : vector<81x32xf32>
    %c0_75 = arith.constant 0 : index
    %c0_76 = arith.constant 0 : index
    %c0_77 = arith.constant 0 : index
    %78 = vector.load %arg3[%c0_75, %c0_76, %c0_77] : memref<4x16x81xf32, #tpu.memory_space<vmem>>, vector<1x16x81xf32>
    %79 = vector.shape_cast %78 : vector<1x16x81xf32> to vector<16x81xf32>
    %cst_78 = arith.constant dense<0.000000e+00> : vector<16x32xf32>
    %80 = tpu.matmul %79, %77, %cst_78 {dimension_numbers = #tpu.dot_dimension_numbers<[1], [0], [0], [1], [0, 0, 1, 1], [], []>} : vector<16x81xf32>, vector<81x32xf32>, vector<16x32xf32> -> vector<16x32xf32>
    %c1_79 = arith.constant 1 : index
    %c0_80 = arith.constant 0 : index
    %c0_81 = arith.constant 0 : index
    %81 = vector.load %arg3[%c1_79, %c0_80, %c0_81] : memref<4x16x81xf32, #tpu.memory_space<vmem>>, vector<1x16x81xf32>
    %82 = vector.shape_cast %81 : vector<1x16x81xf32> to vector<16x81xf32>
    %cst_82 = arith.constant dense<0.000000e+00> : vector<16x32xf32>
    %83 = tpu.matmul %82, %77, %cst_82 {dimension_numbers = #tpu.dot_dimension_numbers<[1], [0], [0], [1], [0, 0, 1, 1], [], []>} : vector<16x81xf32>, vector<81x32xf32>, vector<16x32xf32> -> vector<16x32xf32>
    %c2_83 = arith.constant 2 : index
    %c0_84 = arith.constant 0 : index
    %c0_85 = arith.constant 0 : index
    %84 = vector.load %arg3[%c2_83, %c0_84, %c0_85] : memref<4x16x81xf32, #tpu.memory_space<vmem>>, vector<1x16x81xf32>
    %85 = vector.shape_cast %84 : vector<1x16x81xf32> to vector<16x81xf32>
    %cst_86 = arith.constant dense<0.000000e+00> : vector<16x32xf32>
    %86 = tpu.matmul %85, %77, %cst_86 {dimension_numbers = #tpu.dot_dimension_numbers<[1], [0], [0], [1], [0, 0, 1, 1], [], []>} : vector<16x81xf32>, vector<81x32xf32>, vector<16x32xf32> -> vector<16x32xf32>
    %c3_87 = arith.constant 3 : index
    %c0_88 = arith.constant 0 : index
    %c0_89 = arith.constant 0 : index
    %87 = vector.load %arg3[%c3_87, %c0_88, %c0_89] : memref<4x16x81xf32, #tpu.memory_space<vmem>>, vector<1x16x81xf32>
    %88 = vector.shape_cast %87 : vector<1x16x81xf32> to vector<16x81xf32>
    %cst_90 = arith.constant dense<0.000000e+00> : vector<16x32xf32>
    %89 = tpu.matmul %88, %77, %cst_90 {dimension_numbers = #tpu.dot_dimension_numbers<[1], [0], [0], [1], [0, 0, 1, 1], [], []>} : vector<16x81xf32>, vector<81x32xf32>, vector<16x32xf32> -> vector<16x32xf32>
    %90 = arith.maximumf %80, %83 : vector<16x32xf32>
    %91 = arith.maximumf %86, %89 : vector<16x32xf32>
    %92 = arith.maximumf %90, %91 : vector<16x32xf32>
    %cst_91 = arith.constant 0.000000e+00 : f32
    %93 = vector.broadcast %cst_91 : f32 to vector<4x32xf32>
    %c0_92 = arith.constant 0 : index
    %c0_93 = arith.constant 0 : index
    %c0_94 = arith.constant 0 : index
    %94 = vector.load %arg4[%c0_92, %c0_93, %c0_94] : memref<9x4x16xf32, #tpu.memory_space<vmem>>, vector<1x4x16xf32>
    %95 = vector.shape_cast %94 : vector<1x4x16xf32> to vector<4x16xf32>
    %cst_95 = arith.constant dense<0.000000e+00> : vector<4x32xf32>
    %96 = tpu.matmul %95, %92, %cst_95 {dimension_numbers = #tpu.dot_dimension_numbers<[1], [0], [0], [1], [0, 0, 1, 1], [], []>} : vector<4x16xf32>, vector<16x32xf32>, vector<4x32xf32> -> vector<4x32xf32>
    %c0_96 = arith.constant 0 : index
    %c0_97 = arith.constant 0 : index
    %c0_98 = arith.constant 0 : index
    %97 = vector.load %arg9[%c0_96, %c0_97, %c0_98] : memref<9x32x32xf32, #tpu.memory_space<vmem>>, vector<1x32x32xf32>
    %98 = vector.shape_cast %97 : vector<1x32x32xf32> to vector<32x32xf32>
    %cst_99 = arith.constant dense<0.000000e+00> : vector<4x32xf32>
    %99 = tpu.matmul %96, %98, %cst_99 {dimension_numbers = #tpu.dot_dimension_numbers<[1], [0], [0], [1], [0, 0, 1, 1], [], []>} : vector<4x32xf32>, vector<32x32xf32>, vector<4x32xf32> -> vector<4x32xf32>
    %100 = arith.addf %93, %99 : vector<4x32xf32>
    %c1_100 = arith.constant 1 : index
    %c0_101 = arith.constant 0 : index
    %c0_102 = arith.constant 0 : index
    %101 = vector.load %arg4[%c1_100, %c0_101, %c0_102] : memref<9x4x16xf32, #tpu.memory_space<vmem>>, vector<1x4x16xf32>
    %102 = vector.shape_cast %101 : vector<1x4x16xf32> to vector<4x16xf32>
    %cst_103 = arith.constant dense<0.000000e+00> : vector<4x32xf32>
    %103 = tpu.matmul %102, %92, %cst_103 {dimension_numbers = #tpu.dot_dimension_numbers<[1], [0], [0], [1], [0, 0, 1, 1], [], []>} : vector<4x16xf32>, vector<16x32xf32>, vector<4x32xf32> -> vector<4x32xf32>
    %c1_104 = arith.constant 1 : index
    %c0_105 = arith.constant 0 : index
    %c0_106 = arith.constant 0 : index
    %104 = vector.load %arg9[%c1_104, %c0_105, %c0_106] : memref<9x32x32xf32, #tpu.memory_space<vmem>>, vector<1x32x32xf32>
    %105 = vector.shape_cast %104 : vector<1x32x32xf32> to vector<32x32xf32>
    %cst_107 = arith.constant dense<0.000000e+00> : vector<4x32xf32>
    %106 = tpu.matmul %103, %105, %cst_107 {dimension_numbers = #tpu.dot_dimension_numbers<[1], [0], [0], [1], [0, 0, 1, 1], [], []>} : vector<4x32xf32>, vector<32x32xf32>, vector<4x32xf32> -> vector<4x32xf32>
    %107 = arith.addf %100, %106 : vector<4x32xf32>
    %c2_108 = arith.constant 2 : index
    %c0_109 = arith.constant 0 : index
    %c0_110 = arith.constant 0 : index
    %108 = vector.load %arg4[%c2_108, %c0_109, %c0_110] : memref<9x4x16xf32, #tpu.memory_space<vmem>>, vector<1x4x16xf32>
    %109 = vector.shape_cast %108 : vector<1x4x16xf32> to vector<4x16xf32>
    %cst_111 = arith.constant dense<0.000000e+00> : vector<4x32xf32>
    %110 = tpu.matmul %109, %92, %cst_111 {dimension_numbers = #tpu.dot_dimension_numbers<[1], [0], [0], [1], [0, 0, 1, 1], [], []>} : vector<4x16xf32>, vector<16x32xf32>, vector<4x32xf32> -> vector<4x32xf32>
    %c2_112 = arith.constant 2 : index
    %c0_113 = arith.constant 0 : index
    %c0_114 = arith.constant 0 : index
    %111 = vector.load %arg9[%c2_112, %c0_113, %c0_114] : memref<9x32x32xf32, #tpu.memory_space<vmem>>, vector<1x32x32xf32>
    %112 = vector.shape_cast %111 : vector<1x32x32xf32> to vector<32x32xf32>
    %cst_115 = arith.constant dense<0.000000e+00> : vector<4x32xf32>
    %113 = tpu.matmul %110, %112, %cst_115 {dimension_numbers = #tpu.dot_dimension_numbers<[1], [0], [0], [1], [0, 0, 1, 1], [], []>} : vector<4x32xf32>, vector<32x32xf32>, vector<4x32xf32> -> vector<4x32xf32>
    %114 = arith.addf %107, %113 : vector<4x32xf32>
    %c3_116 = arith.constant 3 : index
    %c0_117 = arith.constant 0 : index
    %c0_118 = arith.constant 0 : index
    %115 = vector.load %arg4[%c3_116, %c0_117, %c0_118] : memref<9x4x16xf32, #tpu.memory_space<vmem>>, vector<1x4x16xf32>
    %116 = vector.shape_cast %115 : vector<1x4x16xf32> to vector<4x16xf32>
    %cst_119 = arith.constant dense<0.000000e+00> : vector<4x32xf32>
    %117 = tpu.matmul %116, %92, %cst_119 {dimension_numbers = #tpu.dot_dimension_numbers<[1], [0], [0], [1], [0, 0, 1, 1], [], []>} : vector<4x16xf32>, vector<16x32xf32>, vector<4x32xf32> -> vector<4x32xf32>
    %c3_120 = arith.constant 3 : index
    %c0_121 = arith.constant 0 : index
    %c0_122 = arith.constant 0 : index
    %118 = vector.load %arg9[%c3_120, %c0_121, %c0_122] : memref<9x32x32xf32, #tpu.memory_space<vmem>>, vector<1x32x32xf32>
    %119 = vector.shape_cast %118 : vector<1x32x32xf32> to vector<32x32xf32>
    %cst_123 = arith.constant dense<0.000000e+00> : vector<4x32xf32>
    %120 = tpu.matmul %117, %119, %cst_123 {dimension_numbers = #tpu.dot_dimension_numbers<[1], [0], [0], [1], [0, 0, 1, 1], [], []>} : vector<4x32xf32>, vector<32x32xf32>, vector<4x32xf32> -> vector<4x32xf32>
    %121 = arith.addf %114, %120 : vector<4x32xf32>
    %c4_124 = arith.constant 4 : index
    %c0_125 = arith.constant 0 : index
    %c0_126 = arith.constant 0 : index
    %122 = vector.load %arg4[%c4_124, %c0_125, %c0_126] : memref<9x4x16xf32, #tpu.memory_space<vmem>>, vector<1x4x16xf32>
    %123 = vector.shape_cast %122 : vector<1x4x16xf32> to vector<4x16xf32>
    %cst_127 = arith.constant dense<0.000000e+00> : vector<4x32xf32>
    %124 = tpu.matmul %123, %92, %cst_127 {dimension_numbers = #tpu.dot_dimension_numbers<[1], [0], [0], [1], [0, 0, 1, 1], [], []>} : vector<4x16xf32>, vector<16x32xf32>, vector<4x32xf32> -> vector<4x32xf32>
    %c4_128 = arith.constant 4 : index
    %c0_129 = arith.constant 0 : index
    %c0_130 = arith.constant 0 : index
    %125 = vector.load %arg9[%c4_128, %c0_129, %c0_130] : memref<9x32x32xf32, #tpu.memory_space<vmem>>, vector<1x32x32xf32>
    %126 = vector.shape_cast %125 : vector<1x32x32xf32> to vector<32x32xf32>
    %cst_131 = arith.constant dense<0.000000e+00> : vector<4x32xf32>
    %127 = tpu.matmul %124, %126, %cst_131 {dimension_numbers = #tpu.dot_dimension_numbers<[1], [0], [0], [1], [0, 0, 1, 1], [], []>} : vector<4x32xf32>, vector<32x32xf32>, vector<4x32xf32> -> vector<4x32xf32>
    %128 = arith.addf %121, %127 : vector<4x32xf32>
    %c5_132 = arith.constant 5 : index
    %c0_133 = arith.constant 0 : index
    %c0_134 = arith.constant 0 : index
    %129 = vector.load %arg4[%c5_132, %c0_133, %c0_134] : memref<9x4x16xf32, #tpu.memory_space<vmem>>, vector<1x4x16xf32>
    %130 = vector.shape_cast %129 : vector<1x4x16xf32> to vector<4x16xf32>
    %cst_135 = arith.constant dense<0.000000e+00> : vector<4x32xf32>
    %131 = tpu.matmul %130, %92, %cst_135 {dimension_numbers = #tpu.dot_dimension_numbers<[1], [0], [0], [1], [0, 0, 1, 1], [], []>} : vector<4x16xf32>, vector<16x32xf32>, vector<4x32xf32> -> vector<4x32xf32>
    %c5_136 = arith.constant 5 : index
    %c0_137 = arith.constant 0 : index
    %c0_138 = arith.constant 0 : index
    %132 = vector.load %arg9[%c5_136, %c0_137, %c0_138] : memref<9x32x32xf32, #tpu.memory_space<vmem>>, vector<1x32x32xf32>
    %133 = vector.shape_cast %132 : vector<1x32x32xf32> to vector<32x32xf32>
    %cst_139 = arith.constant dense<0.000000e+00> : vector<4x32xf32>
    %134 = tpu.matmul %131, %133, %cst_139 {dimension_numbers = #tpu.dot_dimension_numbers<[1], [0], [0], [1], [0, 0, 1, 1], [], []>} : vector<4x32xf32>, vector<32x32xf32>, vector<4x32xf32> -> vector<4x32xf32>
    %135 = arith.addf %128, %134 : vector<4x32xf32>
    %c6_140 = arith.constant 6 : index
    %c0_141 = arith.constant 0 : index
    %c0_142 = arith.constant 0 : index
    %136 = vector.load %arg4[%c6_140, %c0_141, %c0_142] : memref<9x4x16xf32, #tpu.memory_space<vmem>>, vector<1x4x16xf32>
    %137 = vector.shape_cast %136 : vector<1x4x16xf32> to vector<4x16xf32>
    %cst_143 = arith.constant dense<0.000000e+00> : vector<4x32xf32>
    %138 = tpu.matmul %137, %92, %cst_143 {dimension_numbers = #tpu.dot_dimension_numbers<[1], [0], [0], [1], [0, 0, 1, 1], [], []>} : vector<4x16xf32>, vector<16x32xf32>, vector<4x32xf32> -> vector<4x32xf32>
    %c6_144 = arith.constant 6 : index
    %c0_145 = arith.constant 0 : index
    %c0_146 = arith.constant 0 : index
    %139 = vector.load %arg9[%c6_144, %c0_145, %c0_146] : memref<9x32x32xf32, #tpu.memory_space<vmem>>, vector<1x32x32xf32>
    %140 = vector.shape_cast %139 : vector<1x32x32xf32> to vector<32x32xf32>
    %cst_147 = arith.constant dense<0.000000e+00> : vector<4x32xf32>
    %141 = tpu.matmul %138, %140, %cst_147 {dimension_numbers = #tpu.dot_dimension_numbers<[1], [0], [0], [1], [0, 0, 1, 1], [], []>} : vector<4x32xf32>, vector<32x32xf32>, vector<4x32xf32> -> vector<4x32xf32>
    %142 = arith.addf %135, %141 : vector<4x32xf32>
    %c7_148 = arith.constant 7 : index
    %c0_149 = arith.constant 0 : index
    %c0_150 = arith.constant 0 : index
    %143 = vector.load %arg4[%c7_148, %c0_149, %c0_150] : memref<9x4x16xf32, #tpu.memory_space<vmem>>, vector<1x4x16xf32>
    %144 = vector.shape_cast %143 : vector<1x4x16xf32> to vector<4x16xf32>
    %cst_151 = arith.constant dense<0.000000e+00> : vector<4x32xf32>
    %145 = tpu.matmul %144, %92, %cst_151 {dimension_numbers = #tpu.dot_dimension_numbers<[1], [0], [0], [1], [0, 0, 1, 1], [], []>} : vector<4x16xf32>, vector<16x32xf32>, vector<4x32xf32> -> vector<4x32xf32>
    %c7_152 = arith.constant 7 : index
    %c0_153 = arith.constant 0 : index
    %c0_154 = arith.constant 0 : index
    %146 = vector.load %arg9[%c7_152, %c0_153, %c0_154] : memref<9x32x32xf32, #tpu.memory_space<vmem>>, vector<1x32x32xf32>
    %147 = vector.shape_cast %146 : vector<1x32x32xf32> to vector<32x32xf32>
    %cst_155 = arith.constant dense<0.000000e+00> : vector<4x32xf32>
    %148 = tpu.matmul %145, %147, %cst_155 {dimension_numbers = #tpu.dot_dimension_numbers<[1], [0], [0], [1], [0, 0, 1, 1], [], []>} : vector<4x32xf32>, vector<32x32xf32>, vector<4x32xf32> -> vector<4x32xf32>
    %149 = arith.addf %142, %148 : vector<4x32xf32>
    %c8_156 = arith.constant 8 : index
    %c0_157 = arith.constant 0 : index
    %c0_158 = arith.constant 0 : index
    %150 = vector.load %arg4[%c8_156, %c0_157, %c0_158] : memref<9x4x16xf32, #tpu.memory_space<vmem>>, vector<1x4x16xf32>
    %151 = vector.shape_cast %150 : vector<1x4x16xf32> to vector<4x16xf32>
    %cst_159 = arith.constant dense<0.000000e+00> : vector<4x32xf32>
    %152 = tpu.matmul %151, %92, %cst_159 {dimension_numbers = #tpu.dot_dimension_numbers<[1], [0], [0], [1], [0, 0, 1, 1], [], []>} : vector<4x16xf32>, vector<16x32xf32>, vector<4x32xf32> -> vector<4x32xf32>
    %c8_160 = arith.constant 8 : index
    %c0_161 = arith.constant 0 : index
    %c0_162 = arith.constant 0 : index
    %153 = vector.load %arg9[%c8_160, %c0_161, %c0_162] : memref<9x32x32xf32, #tpu.memory_space<vmem>>, vector<1x32x32xf32>
    %154 = vector.shape_cast %153 : vector<1x32x32xf32> to vector<32x32xf32>
    %cst_163 = arith.constant dense<0.000000e+00> : vector<4x32xf32>
    %155 = tpu.matmul %152, %154, %cst_163 {dimension_numbers = #tpu.dot_dimension_numbers<[1], [0], [0], [1], [0, 0, 1, 1], [], []>} : vector<4x32xf32>, vector<32x32xf32>, vector<4x32xf32> -> vector<4x32xf32>
    %156 = arith.addf %149, %155 : vector<4x32xf32>
    %c0_164 = arith.constant 0 : index
    %c0_165 = arith.constant 0 : index
    %157 = vector.load %arg10[%c0_164, %c0_165] : memref<1x32xf32, #tpu.memory_space<vmem>>, vector<1x32xf32>
    %158 = vector.broadcast %157 : vector<1x32xf32> to vector<4x32xf32>
    %159 = arith.addf %156, %158 : vector<4x32xf32>
    %cst_166 = arith.constant 0.000000e+00 : f32
    %160 = vector.broadcast %cst_166 : f32 to vector<4x32xf32>
    %161 = arith.maximumf %159, %160 : vector<4x32xf32>
    %c0_167 = arith.constant 0 : index
    %c0_168 = arith.constant 0 : index
    %162 = vector.load %arg11[%c0_167, %c0_168] : memref<32x16xf32, #tpu.memory_space<vmem>>, vector<32x16xf32>
    %cst_169 = arith.constant dense<0.000000e+00> : vector<4x16xf32>
    %163 = tpu.matmul %161, %162, %cst_169 {dimension_numbers = #tpu.dot_dimension_numbers<[1], [0], [0], [1], [0, 0, 1, 1], [], []>} : vector<4x32xf32>, vector<32x16xf32>, vector<4x16xf32> -> vector<4x16xf32>
    %c0_170 = arith.constant 0 : index
    %c0_171 = arith.constant 0 : index
    %164 = vector.load %arg12[%c0_170, %c0_171] : memref<1x16xf32, #tpu.memory_space<vmem>>, vector<1x16xf32>
    %165 = vector.broadcast %164 : vector<1x16xf32> to vector<4x16xf32>
    %166 = arith.addf %163, %165 : vector<4x16xf32>
    %167 = vector.extract_strided_slice %166 {offsets = [0, 0], sizes = [1, 16], strides = [1, 1]} : vector<4x16xf32> to vector<1x16xf32>
    %c0_172 = arith.constant 0 : index
    %c0_173 = arith.constant 0 : index
    %c0_174 = arith.constant 0 : index
    %168 = vector.load %arg13[%c0_172, %c0_173, %c0_174] : memref<4x16x16xf32, #tpu.memory_space<vmem>>, vector<1x16x16xf32>
    %169 = vector.shape_cast %168 : vector<1x16x16xf32> to vector<16x16xf32>
    %cst_175 = arith.constant dense<0.000000e+00> : vector<1x16xf32>
    %170 = tpu.matmul %167, %169, %cst_175 {dimension_numbers = #tpu.dot_dimension_numbers<[1], [0], [0], [1], [0, 0, 1, 1], [], []>} : vector<1x16xf32>, vector<16x16xf32>, vector<1x16xf32> -> vector<1x16xf32>
    %171 = vector.extract_strided_slice %166 {offsets = [1, 0], sizes = [1, 16], strides = [1, 1]} : vector<4x16xf32> to vector<1x16xf32>
    %c1_176 = arith.constant 1 : index
    %c0_177 = arith.constant 0 : index
    %c0_178 = arith.constant 0 : index
    %172 = vector.load %arg13[%c1_176, %c0_177, %c0_178] : memref<4x16x16xf32, #tpu.memory_space<vmem>>, vector<1x16x16xf32>
    %173 = vector.shape_cast %172 : vector<1x16x16xf32> to vector<16x16xf32>
    %cst_179 = arith.constant dense<0.000000e+00> : vector<1x16xf32>
    %174 = tpu.matmul %171, %173, %cst_179 {dimension_numbers = #tpu.dot_dimension_numbers<[1], [0], [0], [1], [0, 0, 1, 1], [], []>} : vector<1x16xf32>, vector<16x16xf32>, vector<1x16xf32> -> vector<1x16xf32>
    %175 = arith.addf %170, %174 : vector<1x16xf32>
    %176 = vector.extract_strided_slice %166 {offsets = [2, 0], sizes = [1, 16], strides = [1, 1]} : vector<4x16xf32> to vector<1x16xf32>
    %c2_180 = arith.constant 2 : index
    %c0_181 = arith.constant 0 : index
    %c0_182 = arith.constant 0 : index
    %177 = vector.load %arg13[%c2_180, %c0_181, %c0_182] : memref<4x16x16xf32, #tpu.memory_space<vmem>>, vector<1x16x16xf32>
    %178 = vector.shape_cast %177 : vector<1x16x16xf32> to vector<16x16xf32>
    %cst_183 = arith.constant dense<0.000000e+00> : vector<1x16xf32>
    %179 = tpu.matmul %176, %178, %cst_183 {dimension_numbers = #tpu.dot_dimension_numbers<[1], [0], [0], [1], [0, 0, 1, 1], [], []>} : vector<1x16xf32>, vector<16x16xf32>, vector<1x16xf32> -> vector<1x16xf32>
    %180 = arith.addf %175, %179 : vector<1x16xf32>
    %181 = vector.extract_strided_slice %166 {offsets = [3, 0], sizes = [1, 16], strides = [1, 1]} : vector<4x16xf32> to vector<1x16xf32>
    %c3_184 = arith.constant 3 : index
    %c0_185 = arith.constant 0 : index
    %c0_186 = arith.constant 0 : index
    %182 = vector.load %arg13[%c3_184, %c0_185, %c0_186] : memref<4x16x16xf32, #tpu.memory_space<vmem>>, vector<1x16x16xf32>
    %183 = vector.shape_cast %182 : vector<1x16x16xf32> to vector<16x16xf32>
    %cst_187 = arith.constant dense<0.000000e+00> : vector<1x16xf32>
    %184 = tpu.matmul %181, %183, %cst_187 {dimension_numbers = #tpu.dot_dimension_numbers<[1], [0], [0], [1], [0, 0, 1, 1], [], []>} : vector<1x16xf32>, vector<16x16xf32>, vector<1x16xf32> -> vector<1x16xf32>
    %185 = arith.addf %180, %184 : vector<1x16xf32>
    %c0_188 = arith.constant 0 : index
    %c0_189 = arith.constant 0 : index
    %186 = vector.load %arg14[%c0_188, %c0_189] : memref<1x16xf32, #tpu.memory_space<vmem>>, vector<1x16xf32>
    %187 = arith.addf %185, %186 : vector<1x16xf32>
    %cst_190 = arith.constant 0.000000e+00 : f32
    %188 = vector.broadcast %cst_190 : f32 to vector<1x16xf32>
    %189 = arith.maximumf %187, %188 : vector<1x16xf32>
    %c0_191 = arith.constant 0 : index
    %c0_192 = arith.constant 0 : index
    %190 = vector.load %arg15[%c0_191, %c0_192] : memref<16x8xf32, #tpu.memory_space<vmem>>, vector<16x8xf32>
    %cst_193 = arith.constant dense<0.000000e+00> : vector<1x8xf32>
    %191 = tpu.matmul %189, %190, %cst_193 {dimension_numbers = #tpu.dot_dimension_numbers<[1], [0], [0], [1], [0, 0, 1, 1], [], []>} : vector<1x16xf32>, vector<16x8xf32>, vector<1x8xf32> -> vector<1x8xf32>
    %c0_194 = arith.constant 0 : index
    %c0_195 = arith.constant 0 : index
    %192 = vector.load %arg16[%c0_194, %c0_195] : memref<1x8xf32, #tpu.memory_space<vmem>>, vector<1x8xf32>
    %193 = arith.addf %191, %192 : vector<1x8xf32>
    %cst_196 = arith.constant 0.000000e+00 : f32
    %194 = vector.broadcast %cst_196 : f32 to vector<1x8xf32>
    %195 = arith.maximumf %193, %194 : vector<1x8xf32>
    %c0_197 = arith.constant 0 : index
    %c0_198 = arith.constant 0 : index
    %196 = vector.load %arg17[%c0_197, %c0_198] : memref<8x3xf32, #tpu.memory_space<vmem>>, vector<8x3xf32>
    %cst_199 = arith.constant dense<0.000000e+00> : vector<1x3xf32>
    %197 = tpu.matmul %195, %196, %cst_199 {dimension_numbers = #tpu.dot_dimension_numbers<[1], [0], [0], [1], [0, 0, 1, 1], [], []>} : vector<1x8xf32>, vector<8x3xf32>, vector<1x3xf32> -> vector<1x3xf32>
    %c0_200 = arith.constant 0 : index
    %c0_201 = arith.constant 0 : index
    %198 = vector.load %arg18[%c0_200, %c0_201] : memref<1x3xf32, #tpu.memory_space<vmem>>, vector<1x3xf32>
    %199 = arith.addf %197, %198 : vector<1x3xf32>
    %cst_202 = arith.constant 0.000000e+00 : f32
    %200 = vector.broadcast %cst_202 : f32 to vector<1x3xf32>
    %201 = arith.maximumf %199, %200 : vector<1x3xf32>
    %cst_203 = arith.constant dense<0xFF800000> : vector<1xf32>
    %202 = vector.multi_reduction <maximumf>, %201, %cst_203 [1] : vector<1x3xf32> to vector<1xf32>
    %203 = vector.shape_cast %202 : vector<1xf32> to vector<1x1xf32>
    %204 = vector.broadcast %203 : vector<1x1xf32> to vector<1x3xf32>
    %205 = arith.subf %201, %204 : vector<1x3xf32>
    %206 = math.exp %205 : vector<1x3xf32>
    %cst_204 = arith.constant dense<0.000000e+00> : vector<1xf32>
    %207 = vector.multi_reduction <add>, %206, %cst_204 [1] : vector<1x3xf32> to vector<1xf32>
    %208 = vector.shape_cast %207 : vector<1xf32> to vector<1x1xf32>
    %209 = tpu.reciprocal %208 {approx = true} : vector<1x1xf32> -> vector<1x1xf32>
    %210 = vector.broadcast %209 : vector<1x1xf32> to vector<1x3xf32>
    %211 = arith.mulf %206, %210 : vector<1x3xf32>
    %c0_205 = arith.constant 0 : index
    %c0_206 = arith.constant 0 : index
    %c0_207 = arith.constant 0 : index
    %212 = vector.load %arg19[%c0_205, %c0_206, %c0_207] : memref<1x1x3xf32, #tpu.memory_space<vmem>>, vector<1x1x3xf32>
    %213 = vector.shape_cast %212 : vector<1x1x3xf32> to vector<1x3xf32>
    %214 = vector.shape_cast %211 : vector<1x3xf32> to vector<1x1x3xf32>
    tpu.vector_store %arg19[%c0_205, %c0_206, %c0_207], %214 {strides = array<i32>} : memref<1x1x3xf32, #tpu.memory_space<vmem>>, vector<1x1x3xf32>,
    return
  }
  func.func @transform_0(%arg0: i32) -> (i32, i32, i32) {
    %c0_i32 = arith.constant 0 : i32
    %c0_i32_0 = arith.constant 0 : i32
    %c0_i32_1 = arith.constant 0 : i32
    return %arg0, %c0_i32, %c0_i32_0 : i32, i32, i32
  }
  func.func @transform_1(%arg0: i32) -> (i32, i32, i32) {
    %c0_i32 = arith.constant 0 : i32
    %c0_i32_0 = arith.constant 0 : i32
    %c0_i32_1 = arith.constant 0 : i32
    %c0_i32_2 = arith.constant 0 : i32
    return %c0_i32, %c0_i32_0, %c0_i32_1 : i32, i32, i32
  }
  func.func @transform_2(%arg0: i32) -> (i32, i32, i32) {
    %c0_i32 = arith.constant 0 : i32
    %c0_i32_0 = arith.constant 0 : i32
    %c0_i32_1 = arith.constant 0 : i32
    %c0_i32_2 = arith.constant 0 : i32
    return %c0_i32, %c0_i32_0, %c0_i32_1 : i32, i32, i32
  }
  func.func @transform_3(%arg0: i32) -> (i32, i32, i32) {
    %c0_i32 = arith.constant 0 : i32
    %c0_i32_0 = arith.constant 0 : i32
    %c0_i32_1 = arith.constant 0 : i32
    %c0_i32_2 = arith.constant 0 : i32
    return %c0_i32, %c0_i32_0, %c0_i32_1 : i32, i32, i32
  }
  func.func @transform_4(%arg0: i32) -> (i32, i32) {
    %c0_i32 = arith.constant 0 : i32
    %c0_i32_0 = arith.constant 0 : i32
    %c0_i32_1 = arith.constant 0 : i32
    return %c0_i32, %c0_i32_0 : i32, i32
  }
  func.func @transform_5(%arg0: i32) -> (i32, i32) {
    %c0_i32 = arith.constant 0 : i32
    %c0_i32_0 = arith.constant 0 : i32
    %c0_i32_1 = arith.constant 0 : i32
    return %c0_i32, %c0_i32_0 : i32, i32
  }
  func.func @transform_6(%arg0: i32) -> (i32, i32, i32) {
    %c0_i32 = arith.constant 0 : i32
    %c0_i32_0 = arith.constant 0 : i32
    %c0_i32_1 = arith.constant 0 : i32
    %c0_i32_2 = arith.constant 0 : i32
    return %c0_i32, %c0_i32_0, %c0_i32_1 : i32, i32, i32
  }
  func.func @transform_7(%arg0: i32) -> (i32, i32) {
    %c0_i32 = arith.constant 0 : i32
    %c0_i32_0 = arith.constant 0 : i32
    %c0_i32_1 = arith.constant 0 : i32
    return %c0_i32, %c0_i32_0 : i32, i32
  }
  func.func @transform_8(%arg0: i32) -> (i32, i32, i32) {
    %c0_i32 = arith.constant 0 : i32
    %c0_i32_0 = arith.constant 0 : i32
    %c0_i32_1 = arith.constant 0 : i32
    %c0_i32_2 = arith.constant 0 : i32
    return %c0_i32, %c0_i32_0, %c0_i32_1 : i32, i32, i32
  }
  func.func @transform_9(%arg0: i32) -> (i32, i32) {
    %c0_i32 = arith.constant 0 : i32
    %c0_i32_0 = arith.constant 0 : i32
    %c0_i32_1 = arith.constant 0 : i32
    return %c0_i32, %c0_i32_0 : i32, i32
  }
  func.func @transform_10(%arg0: i32) -> (i32, i32) {
    %c0_i32 = arith.constant 0 : i32
    %c0_i32_0 = arith.constant 0 : i32
    %c0_i32_1 = arith.constant 0 : i32
    return %c0_i32, %c0_i32_0 : i32, i32
  }
  func.func @transform_11(%arg0: i32) -> (i32, i32) {
    %c0_i32 = arith.constant 0 : i32
    %c0_i32_0 = arith.constant 0 : i32
    %c0_i32_1 = arith.constant 0 : i32
    return %c0_i32, %c0_i32_0 : i32, i32
  }
  func.func @transform_12(%arg0: i32) -> (i32, i32, i32) {
    %c0_i32 = arith.constant 0 : i32
    %c0_i32_0 = arith.constant 0 : i32
    %c0_i32_1 = arith.constant 0 : i32
    %c0_i32_2 = arith.constant 0 : i32
    return %c0_i32, %c0_i32_0, %c0_i32_1 : i32, i32, i32
  }
  func.func @transform_13(%arg0: i32) -> (i32, i32) {
    %c0_i32 = arith.constant 0 : i32
    %c0_i32_0 = arith.constant 0 : i32
    %c0_i32_1 = arith.constant 0 : i32
    return %c0_i32, %c0_i32_0 : i32, i32
  }
  func.func @transform_14(%arg0: i32) -> (i32, i32) {
    %c0_i32 = arith.constant 0 : i32
    %c0_i32_0 = arith.constant 0 : i32
    %c0_i32_1 = arith.constant 0 : i32
    return %c0_i32, %c0_i32_0 : i32, i32
  }
  func.func @transform_15(%arg0: i32) -> (i32, i32) {
    %c0_i32 = arith.constant 0 : i32
    %c0_i32_0 = arith.constant 0 : i32
    %c0_i32_1 = arith.constant 0 : i32
    return %c0_i32, %c0_i32_0 : i32, i32
  }
  func.func @transform_16(%arg0: i32) -> (i32, i32) {
    %c0_i32 = arith.constant 0 : i32
    %c0_i32_0 = arith.constant 0 : i32
    %c0_i32_1 = arith.constant 0 : i32
    return %c0_i32, %c0_i32_0 : i32, i32
  }
  func.func @transform_17(%arg0: i32) -> (i32, i32) {
    %c0_i32 = arith.constant 0 : i32
    %c0_i32_0 = arith.constant 0 : i32
    %c0_i32_1 = arith.constant 0 : i32
    return %c0_i32, %c0_i32_0 : i32, i32
  }
  func.func @transform_18(%arg0: i32) -> (i32, i32, i32) {
    %c0_i32 = arith.constant 0 : i32
    %c0_i32_0 = arith.constant 0 : i32
    %c0_i32_1 = arith.constant 0 : i32
    return %arg0, %c0_i32, %c0_i32_0 : i32, i32, i32
  }
}

</mosaic_0001>

<bundles_post_ra>
// kernel: cnn_forward.1
= control target key start
LH: loop header
LB: loop body
LE: loop exit
PB: predicated region body
PF: predicated region fallthrough
CT: control target
= control target key end

     0   :  { %s5386_s0 = inlined_call_operand.vmem [shape: f32[2,121,16], index: 0, kind: input, shape index: {}]   ;;  %s5387_s1 = inlined_call_operand.vmem [shape: f32[9,81,121], index: 1, kind: input, shape index: {}]   ;;  %s5388_s2 = inlined_call_operand.hbm [shape: f32[4,16,81], index: 2, kind: input, shape index: {}]   ;;  %s5389_s3 = inlined_call_operand.vmem [shape: f32[9,4,16], index: 3, kind: input, shape index: {}]   ;;  %s5390_s4 = inlined_call_operand.vmem [shape: f32[16,16], index: 4, kind: input, shape index: {}]   ;;  %s5391_s5 = inlined_call_operand.vmem [shape: f32[1,16], index: 5, kind: input, shape index: {}]   ;;  %s5392_s6 = inlined_call_operand.hbm [shape: f32[9,16,32], index: 6, kind: input, shape index: {}]   ;;  %s5393_s7 = inlined_call_operand.vmem [shape: f32[1,32], index: 7, kind: input, shape index: {}]   ;;  %s5394_s8 = inlined_call_operand.vmem [shape: f32[9,32,32], index: 8, kind: input, shape index: {}]   ;;  %s5395_s9 = inlined_call_operand.vmem [shape: f32[1,32], index: 9, kind: input, shape index: {}]   ;;  %s5396_s10 = inlined_call_operand.vmem [shape: f32[32,16], index: 10, kind: input, shape index: {}]   ;;  %s5397_s11 = inlined_call_operand.vmem [shape: f32[1,16], index: 11, kind: input, shape index: {}]   ;;  %s5398_s12 = inlined_call_operand.vmem [shape: f32[4,16,16], index: 12, kind: input, shape index: {}]   ;;  %s5399_s13 = inlined_call_operand.vmem [shape: f32[1,16], index: 13, kind: input, shape index: {}]   ;;  %s5400_s14 = inlined_call_operand.vmem [shape: f32[16,8], index: 14, kind: input, shape index: {}]   ;;  %s5401_s15 = inlined_call_operand.vmem [shape: f32[1,8], index: 15, kind: input, shape index: {}]   ;;  %s5402_s16 = inlined_call_operand.vmem [shape: f32[8,3], index: 16, kind: input, shape index: {}]   ;;  %s5403_s17 = inlined_call_operand.vmem [shape: f32[1,3], index: 17, kind: input, shape index: {}]   ;;  %s5404_s18 = inlined_call_operand.hbm [shape: f32[2,1,3], index: 18, kind: output, shape index: {}]  }
   0x1   :  { %5414 = sst [smem:[#allocation17_spill]] %s5386_s0 }
   0x2   :  { %5415 = sst [smem:[#allocation18_spill]] %s5387_s1 }
   0x3   :  { %5416 = sst [smem:[#allocation19_spill]] %s5388_s2 }
   0x4   :  { %5417 = sst [smem:[#allocation20_spill]] %s5389_s3 }
   0x5   :  { %5418 = sst [smem:[#allocation21_spill]] %s5404_s18 }
   0x6   :  { %23 = vsyncpa [#allocation3], 0 }
   0x7   :  { %24 = vsyncpa [#allocation6], 0 }
   0x8   :  { %25 = vsyncpa [#allocation4], 0 }
   0x9   :  { %27 = vsyncpa [#allocation4 + $0x1], 0  ;;  %s4124_s27 = smov 0   ;;  %s4126_s28 = smov 0  }
   0xa   :  { %s4128_s29 = smov 0   ;;  %s4130_s30 = smov 0  }
   0xb LB: > { %5419 = sst [smem:[#allocation11_spill]] %s4011_s27  ;;  %s4145_s0 = sadd.s32 4294967295, %s4023_s30   ;;  %s4023_s30 = sphi %s4130_s30, %s5437_s30   ;;  %s4019_s29 = sphi %s4128_s29, %s5439_s29   ;;  %s4015_s28 = sphi %s4126_s28, %s5441_s28   ;;  %s4011_s27 = sphi %s4124_s27, %s5440_s27  }
   0xc   : > { %5420 = sst [smem:[#allocation12_spill]] %s4019_s29  ;;  %s3416_s19 = sadd.s32 4294967294, %s4023_s30  }
   0xd   : > { %5421 = sst [smem:[#allocation13_spill]] %s4023_s30  ;;  %s4149_s1 = sadd.s32 1, %s4023_s30  }
   0xe   : > { %5422 = sst [smem:[#allocation14_spill]] %s4149_s1  ;;  %s423_s20 = sadd.s32 1, %s4019_s29 }
   0xf   : > { %s420_s21 = ssub.s32 %s4023_s30, %s4149_s1  ;;  %p433_p0 = scmp.ne.s32.totalorder %s4019_s29, %s4015_s28 }
  0x10   : > { %p421_p1 = scmp.eq.s32.totalorder %s420_s21, 0  ;;  %p434_p2 = scmp.eq.s32.totalorder %s4145_s0, 1 }
  0x11   : > { %p439_p3 = scmp.ne.s32.totalorder %s4015_s28, %s4011_s27  ;;  %p440_p4 = scmp.eq.s32.totalorder %s3416_s19, 1 }
  0x12   : > { %s4160_s22 = scalar_select %p421_p1, %s4019_s29, %s423_s20  }
  0x13   : > { %p4162_p5 = por %p434_p2, %p433_p0  ;;  %p4166_p6 = por %p440_p4, %p439_p3 }
  0x14   : > { %5423 = sst [smem:[#allocation15_spill]] %s4160_s22  ;;  %p3417_p7 = scmp.ge.s32.totalorder %s4023_s30, 1 }
  0x15   : > { %s5425_s23 = scalar_select %p4166_p6, 1, 0 }
  0x16   : > { %p447_p8 = scmp.lt.s32.totalorder %s4023_s30, 3  ;;  %p3844_p9 = scmp.eq.s32.totalorder %s4145_s0, 0 }
  0x17   : > { %5426 = sst [smem:[#allocation16_spill]] %s5425_s23  ;;  %s4025_s21 = smov [#allocation2]  }
  0x18   : > { %p4173_p10 = pnand %p3417_p7, %p447_p8  ;;  %s5428_s19 = sld [smem:[#allocation19_spill]] }
  0x19   : > { %s463_s22 = sshll.u32 %s4025_s21, 4  ;;  %s484_s23 = sshll.u32 %s5392_s6, 4  ;;  %s464_s22 = int_to_ptr.vmem [resolvable:$true] %s463_s22  ;;  %s485_s23 = int_to_ptr.hbm [resolvable:$true] %s484_s23 }
  0x1a   : > { %p3833_p11 = pneg %p4173_p10  ;;  %s4026_s27 = smov 128  }
  0x1b   : > { %s4027_s30 = smov 8   ;;  %s4028_s18 = smov [#allocation5]  }
  0x1c   : > { %p3834_p12 = pnand %p3844_p9, %p3833_p11  ;;  %s486_s25 = sshll.u32 %s4028_s18, 4  ;;  %s487_s25 = int_to_ptr.vmem [resolvable:$true] %s486_s25 }
  0x1d   : > { %543 = sbr.rel (%p4173_p10) target bundleno = 2460 (0x99c), region = 92 }
  0x1e   : > { %s461_s20 = sshll.u32 %s5428_s19, 4  ;;  %s462_s20 = int_to_ptr.hbm [resolvable:$true] %s461_s20 }
  0x1f   : > { %3836 = dma.hbm_to_vmem [thread:$0]  (!%p3834_p12), %s462_s20, 1024, %s464_s22, [#allocation3], %s4026_s27, %s4026_s27, %s4027_s30  }
  0x20   : > { %3839 = dma.hbm_to_vmem [thread:$0]  (!%p3834_p12), %s485_s23, 2304, %s487_s25, [#allocation6], %s4026_s27, %s4026_s27, %s4027_s30  }
  0x22   : > { %3998 = dma.done.wait (%p3844_p9), [#allocation3], 1024  }
  0x23   : > { %4000 = vsyncadd (%p3844_p9), [#allocation3], 4294966272 }
  0x24   : > { %4002 = dma.done.wait (%p3844_p9), [#allocation6], 2304  }
  0x25   : > { %4004 = vsyncadd (%p3844_p9), [#allocation6], 4294964992  ;;  %p602_p13 = scmp.lt.s32.totalorder %s4145_s0, 1  ;;  %s5429_s1 = sld [smem:[#allocation17_spill]]  ;;  %v624_v0 = vld [vmem:[%s5390_s4 + $0x8] sm:$0xff]  ;;  %v623_v1 = vld [vmem:[%s5390_s4] sm:$0xff] }
  0x26   : > { %692 = vmatpush.msra.mxu0 %v624_v0  ;;  %vm629_vm0 = vcmask 130048   ;;  %v4253_v33 = vld [vmem:[%s5391_s5] ss:$0 sm:$0xff]  ;;  %vm804_vm1 = vcmask 1040384   ;;  %vm770_vm2 = vcmask 990208   ;;  %vm2496_vm3 = vcmask 662528  }
  0x27   : > { %s603_s18 = scalar_select %p602_p13, %s4145_s0, 1  ;;  %vm2689_vm4 = vcmask 261120   ;;  %vm3288_vm5 = vcmask 64512   ;;  %vm3313_vm6 = vcmask 16384  }
  0x28   : > { %693 = vmatpush.msra.mxu0 %v623_v1  ;;  %s5432_s3 = sld [smem:[#allocation20_spill]]  ;;  %s600_s24 = sand.u32 1, %s4015_s28  }
  0x29   : > { %s3822_s27 = sshll.u32 %s603_s18, 7  ;;  %s5433_s20 = sld [smem:[#allocation21_spill]] }
  0x2a   : > { %s601_s25 = scalar_lea.vmem [#allocation7], %s600_s24  ;;  %s3327_s29 = scalar_lea.sflag [#allocation4], %s600_s24 }
  0x2b   : > { %s4202_s22 = scalar_lea.vmem %s5429_s1, %s3822_s27  ;;  %s5430_s27 = sld [smem:[#allocation18_spill]] }
  0x2c   : > { %v607_v2 = vld [vmem:[%s4202_s22] sm:$0xff]  ;;  %v608_v3 = vld [vmem:[%s4202_s22 + $0x8] sm:$0xff]  ;;  %v609_v4 = vld [vmem:[%s4202_s22 + $0x10] sm:$0xff]  ;;  %s3337_s18 = sshll.u32 %s601_s25, 4  ;;  %s3338_s18 = int_to_ptr.vmem [resolvable:$true] %s3337_s18 }
  0x2d   : > { %3426 = vmatmul.msk.f32.vlgmr.msra.gmra.mxu0 %vm629_vm0, %v607_v2  ;;  %v610_v5 = vld [vmem:[%s4202_s22 + $0x18] sm:$0xff]  ;;  %v611_v6 = vld [vmem:[%s4202_s22 + $0x20] sm:$0xff]  ;;  %v612_v7 = vld [vmem:[%s4202_s22 + $0x28] sm:$0xff] }
  0x2e   : > { %v613_v8 = vld [vmem:[%s4202_s22 + $0x30] sm:$0xff]  ;;  %v614_v9 = vld [vmem:[%s4202_s22 + $0x38] sm:$0xff]  ;;  %v615_v10 = vld [vmem:[%s4202_s22 + $0x40] sm:$0xff] }
  0x2f   : > { %v616_v11 = vld [vmem:[%s4202_s22 + $0x48] sm:$0xff]  ;;  %v617_v12 = vld [vmem:[%s4202_s22 + $0x50] sm:$0xff]  ;;  %v618_v13 = vld [vmem:[%s4202_s22 + $0x58] sm:$0xff]  ;;  %s3335_s21 = scalar_lea.hbm %s5433_s20, %s4145_s0  ;;  %s3973_s0 = scalar_lea.hbm %s5433_s20, 2 }
  0x30   : > { %v619_v14 = vld [vmem:[%s4202_s22 + $0x60] sm:$0xff]  ;;  %v620_v15 = vld [vmem:[%s4202_s22 + $0x68] sm:$0xff]  ;;  %v621_v16 = vld [vmem:[%s4202_s22 + $0x70] sm:$0xff] }
  0x31   : > { %v622_v17 = vld [vmem:[%s4202_s22 + $0x78] sm:$0x1]  ;;  %s5431_s1 = smov %s5430_s27 }
  0x35   : > { %3427 = vmatmul.msk.f32.gmra.mxu0 %vm629_vm0, %v608_v3  ;;  %v759_v3 = vld [vmem:[%s5430_s27] sm:$0xff]  ;;  %s3339_s27 = sshll.u32 %s3335_s21, 4  ;;  %s3340_s27 = int_to_ptr.hbm [resolvable:$true] %s3339_s27 }
  0x36   : > { %s3967_s30 = sshra.s32 %s3340_s27, 4  ;;  %s3968_s30 = int_to_ptr.hbm [resolvable:$true] %s3967_s30 }
  0x37   : > { %s3969_s22 = scalar_lea.hbm %s3968_s30, 1  ;;  %p3974_p3 = scmp.lt.s32.totalorder %s3968_s30, %s5433_s20 }
  0x38   : > { %p3970_p0 = scmp.ne.s32.totalorder %s3968_s30, %s3969_s22  ;;  %p3975_p4 = scmp.lt.s32.totalorder %s3973_s0, %s3969_s22 }
  0x3a   : > { %p3971_p1 = pnand %p3970_p0, %p4162_p5  ;;  %p3976_p7 = por %p3975_p4, %p3974_p3 }
  0x3c   : > { %p3972_p2 = pneg %p3971_p1 }
  0x3d   : > { %3428 = vmatmul.msk.f32.gmra.mxu0 %vm629_vm0, %v609_v4  ;;  %v3454_v4 = vld [vmem:[%s5431_s1 + $0x58] sm:$0xff] }
  0x3e   : > { %p3977_p8 = pnand %p3976_p7, %p3972_p2 }
  0x45   : > { %3429 = vmatmul.msk.f32.gmra.mxu0 %vm629_vm0, %v610_v5  ;;  %v3533_v5 = vld [vmem:[%s5431_s1 + $0x108] sm:$0xff] }
  0x4d   : > { %3430 = vmatmul.msk.f32.gmra.mxu0 %vm629_vm0, %v611_v6  ;;  %v760_v6 = vld [vmem:[%s5431_s1 + $0x8] sm:$0xff] }
  0x55   : > { %3431 = vmatmul.msk.f32.gmra.mxu0 %vm629_vm0, %v612_v7  ;;  %v3455_v7 = vld [vmem:[%s5431_s1 + $0x60] sm:$0xff] }
  0x5d   : > { %3432 = vmatmul.msk.f32.gmra.mxu0 %vm629_vm0, %v613_v8  ;;  %v761_v8 = vld [vmem:[%s5431_s1 + $0x10] sm:$0xff] }
  0x65   : > { %3433 = vmatmul.msk.f32.gmra.mxu0 %vm629_vm0, %v614_v9  ;;  %v3456_v9 = vld [vmem:[%s5431_s1 + $0x68] sm:$0xff] }
  0x6d   : > { %3434 = vmatmul.msk.f32.gmra.mxu0 %vm629_vm0, %v615_v10  ;;  %v762_v10 = vld [vmem:[%s5431_s1 + $0x18] sm:$0xff] }
  0x75   : > { %3435 = vmatmul.msk.f32.gmra.mxu0 %vm629_vm0, %v616_v11  ;;  %v3457_v11 = vld [vmem:[%s5431_s1 + $0x70] sm:$0xff] }
  0x7d   : > { %3436 = vmatmul.msk.f32.gmra.mxu0 %vm629_vm0, %v617_v12  ;;  %v763_v12 = vld [vmem:[%s5431_s1 + $0x20] sm:$0xff] }
  0x85   : > { %3437 = vmatmul.msk.f32.gmra.mxu0 %vm629_vm0, %v618_v13  ;;  %v3458_v13 = vld [vmem:[%s5431_s1 + $0x78] sm:$0xff] }
  0x8d   : > { %3438 = vmatmul.msk.f32.gmra.mxu0 %vm629_vm0, %v619_v14  ;;  %v764_v14 = vld [vmem:[%s5431_s1 + $0x28] sm:$0xff] }
  0x95   : > { %3439 = vmatmul.msk.f32.gmra.mxu0 %vm629_vm0, %v620_v15  ;;  %v3459_v15 = vld [vmem:[%s5431_s1 + $0x80] sm:$0xff] }
  0x9d   : > { %3440 = vmatmul.msk.f32.gmra.mxu0 %vm629_vm0, %v621_v16  ;;  %v765_v16 = vld [vmem:[%s5431_s1 + $0x30] sm:$0xff] }
  0xa5   : > { %3441 = vmatmul.msk.f32.gmra.mxu0 %vm629_vm0, %v622_v17  ;;  %v3460_v17 = vld [vmem:[%s5431_s1 + $0x88] sm:$0xff] }
  0xaa   : > { %v4242_v18 = vpop.f32.mrf.mxu0 }
  0xab   : > { %v696_v63 = vadd.f32 %v4253_v33, %v4242_v18  ;;  %v766_v18 = vld [vmem:[%s5431_s1 + $0x38] sm:$0xff] }
  0xad   : > { %v4350_v2 = vmax.f32 %v696_v63, 0.0 }
  0xb2   : > { %v4244_v19 = vpop.f32.mrf.mxu0 }
  0xb3   : > { %v699_v61 = vadd.f32 %v4253_v33, %v4244_v19  ;;  %v3461_v19 = vld [vmem:[%s5431_s1 + $0x90] sm:$0xff] }
  0xb5   : > { %v4345_v1 = vmax.f32 %v699_v61, 0.0  ;;  %v3509_v61 = vld [vmem:[%s5431_s1 + $0x100] sm:$0x1] }
  0xba   : > { %v4246_v20 = vpop.f32.mrf.mxu0 }
  0xbb   : > { %v702_v59 = vadd.f32 %v4253_v33, %v4246_v20  ;;  %v767_v20 = vld [vmem:[%s5431_s1 + $0x40] sm:$0xff] }
  0xbd   : > { %v4340_v0 = vmax.f32 %v702_v59, 0.0 }
  0xc2   : > { %v4248_v21 = vpop.f32.mrf.mxu0 }
  0xc3   : > { %v705_v57 = vadd.f32 %v4253_v33, %v4248_v21  ;;  %v3462_v21 = vld [vmem:[%s5431_s1 + $0x98] sm:$0xff] }
  0xc5   : > { %v4333_v62 = vmax.f32 %v705_v57, 0.0  ;;  %v3534_v57 = vld [vmem:[%s5431_s1 + $0x110] sm:$0xff] }
  0xca   : > { %v707_v22 = vpop.f32.mrf.mxu0 }
  0xcb   : > { %v708_v55 = vadd.f32 %v4253_v33, %v707_v22  ;;  %v768_v22 = vld [vmem:[%s5431_s1 + $0x48] sm:$0xff] }
  0xcd   : > { %v4326_v60 = vmax.f32 %v708_v55, 0.0 }
  0xd2   : > { %v710_v23 = vpop.f32.mrf.mxu0 }
  0xd3   : > { %v711_v53 = vadd.f32 %v4253_v33, %v710_v23  ;;  %v3463_v23 = vld [vmem:[%s5431_s1 + $0xa0] sm:$0xff] }
  0xd5   : > { %v4319_v58 = vmax.f32 %v711_v53, 0.0  ;;  %v3508_v53 = vld [vmem:[%s5431_s1 + $0xf8] sm:$0xff] }
  0xda   : > { %v713_v24 = vpop.f32.mrf.mxu0 }
  0xdb   : > { %v714_v51 = vadd.f32 %v4253_v33, %v713_v24  ;;  %v769_v24 = vld [vmem:[%s5431_s1 + $0x50] sm:$0x1] }
  0xdd   : > { %v4312_v56 = vmax.f32 %v714_v51, 0.0 }
  0xe2   : > { %v716_v25 = vpop.f32.mrf.mxu0 }
  0xe3   : > { %v717_v49 = vadd.f32 %v4253_v33, %v716_v25  ;;  %v3464_v25 = vld [vmem:[%s5431_s1 + $0xa8] sm:$0x1] }
  0xe5   : > { %v4306_v54 = vmax.f32 %v717_v49, 0.0  ;;  %v3507_v49 = vld [vmem:[%s5431_s1 + $0xf0] sm:$0xff] }
  0xea   : > { %v719_v26 = vpop.f32.mrf.mxu0 }
  0xeb   : > { %v720_v47 = vadd.f32 %v4253_v33, %v719_v26  ;;  %v3499_v26 = vld [vmem:[%s5431_s1 + $0xb0] sm:$0xff] }
  0xed   : > { %v4300_v52 = vmax.f32 %v720_v47, 0.0 }
  0xf2   : > { %v722_v27 = vpop.f32.mrf.mxu0 }
  0xf3   : > { %v723_v45 = vadd.f32 %v4253_v33, %v722_v27  ;;  %v3500_v27 = vld [vmem:[%s5431_s1 + $0xb8] sm:$0xff] }
  0xf5   : > { %v4294_v50 = vmax.f32 %v723_v45, 0.0 }
  0xfa   : > { %v725_v28 = vpop.f32.mrf.mxu0 }
  0xfb   : > { %v726_v43 = vadd.f32 %v4253_v33, %v725_v28  ;;  %v957_v28 = vld [vmem:[#allocation5 + $0x18] sm:$0xff] }
  0xfc   : > { %1005 = vmatpush.msra.mxu3 %v957_v28 }
  0xfd   : > { %v4288_v48 = vmax.f32 %v726_v43, 0.0  ;;  %v3506_v43 = vld [vmem:[%s5431_s1 + $0xe8] sm:$0xff] }
 0x102   : > { %v728_v29 = vpop.f32.mrf.mxu0 }
 0x103   : > { %v729_v41 = vadd.f32 %v4253_v33, %v728_v29  ;;  %v956_v29 = vld [vmem:[#allocation5 + $0x10] sm:$0xff] }
 0x104   : > { %1006 = vmatpush.msra.mxu3 %v956_v29  ;;  %v3577_v29 = vld [vmem:[%s5431_s1 + $0x1b0] sm:$0x1] }
 0x105   : > { %v4282_v46 = vmax.f32 %v729_v41, 0.0 }
 0x10a   : > { %v731_v30 = vpop.f32.mrf.mxu0 }
 0x10b   : > { %v732_v39 = vadd.f32 %v4253_v33, %v731_v30  ;;  %v3501_v30 = vld [vmem:[%s5431_s1 + $0xc0] sm:$0xff] }
 0x10d   : > { %v4276_v44 = vmax.f32 %v732_v39, 0.0 }
 0x112   : > { %v734_v31 = vpop.f32.mrf.mxu0 }
 0x113   : > { %v735_v37 = vadd.f32 %v4253_v33, %v734_v31  ;;  %v3502_v31 = vld [vmem:[%s5431_s1 + $0xc8] sm:$0xff] }
 0x115   : > { %v4270_v42 = vmax.f32 %v735_v37, 0.0  ;;  %v3505_v37 = vld [vmem:[%s5431_s1 + $0xe0] sm:$0xff] }
 0x11a   : > { %v737_v32 = vpop.f32.mrf.mxu0 }
 0x11b   : > { %v738_v35 = vadd.f32 %v4253_v33, %v737_v32  ;;  %v3503_v32 = vld [vmem:[%s5431_s1 + $0xd0] sm:$0xff] }
 0x11d   : > { %v4261_v40 = vmax.f32 %v738_v35, 0.0 }
 0x122   : > { %v740_v34 = vpop.f32.mrf.mxu0 }
 0x123   : > { %v741_v36 = vadd.f32 %v4253_v33, %v740_v34  ;;  %v3504_v34 = vld [vmem:[%s5431_s1 + $0xd8] sm:$0xff] }
 0x125   : > { %v4258_v38 = vmax.f32 %v741_v36, 0.0 }
 0x127   : > { %3442 = vmatpush.msk.msra.mxu1 %vm804_vm1, %v4258_v38  ;;  %3465 = vmatpush.msk.msra.mxu2 %vm804_vm1, %v4258_v38 }
 0x128   : > { %3544 = vmatpush.msk.msrb.mxu0 %vm804_vm1, %v4258_v38 }
 0x129   : > { %809 = vmatpush.msra.mxu1 %v4261_v40  ;;  %906 = vmatpush.msra.mxu2 %v4261_v40 }
 0x12a   : > { %1362 = vmatpush.msrb.mxu0 %v4261_v40 }
 0x12b   : > { %810 = vmatpush.msra.mxu1 %v4270_v42  ;;  %907 = vmatpush.msra.mxu2 %v4270_v42 }
 0x12c   : > { %1363 = vmatpush.msrb.mxu0 %v4270_v42 }
 0x12d   : > { %811 = vmatpush.msra.mxu1 %v4276_v44  ;;  %908 = vmatpush.msra.mxu2 %v4276_v44 }
 0x12e   : > { %1364 = vmatpush.msrb.mxu0 %v4276_v44 }
 0x12f   : > { %812 = vmatpush.msra.mxu1 %v4282_v46  ;;  %909 = vmatpush.msra.mxu2 %v4282_v46 }
 0x130   : > { %1365 = vmatpush.msrb.mxu0 %v4282_v46 }
 0x131   : > { %813 = vmatpush.msra.mxu1 %v4288_v48  ;;  %910 = vmatpush.msra.mxu2 %v4288_v48 }
 0x132   : > { %1366 = vmatpush.msrb.mxu0 %v4288_v48 }
 0x133   : > { %814 = vmatpush.msra.mxu1 %v4294_v50  ;;  %911 = vmatpush.msra.mxu2 %v4294_v50 }
 0x134   : > { %1367 = vmatpush.msrb.mxu0 %v4294_v50 }
 0x135   : > { %815 = vmatpush.msra.mxu1 %v4300_v52  ;;  %912 = vmatpush.msra.mxu2 %v4300_v52 }
 0x136   : > { %1368 = vmatpush.msrb.mxu0 %v4300_v52 }
 0x137   : > { %816 = vmatpush.msra.mxu1 %v4306_v54  ;;  %913 = vmatpush.msra.mxu2 %v4306_v54 }
 0x138   : > { %1369 = vmatpush.msrb.mxu0 %v4306_v54 }
 0x139   : > { %817 = vmatpush.msra.mxu1 %v4312_v56  ;;  %914 = vmatpush.msra.mxu2 %v4312_v56 }
 0x13a   : > { %1370 = vmatpush.msrb.mxu0 %v4312_v56 }
 0x13b   : > { %818 = vmatpush.msra.mxu1 %v4319_v58  ;;  %915 = vmatpush.msra.mxu2 %v4319_v58 }
 0x13c   : > { %1371 = vmatpush.msrb.mxu0 %v4319_v58 }
 0x13d   : > { %819 = vmatpush.msra.mxu1 %v4326_v60  ;;  %916 = vmatpush.msra.mxu2 %v4326_v60 }
 0x13e   : > { %1372 = vmatpush.msrb.mxu0 %v4326_v60 }
 0x13f   : > { %820 = vmatpush.msra.mxu1 %v4333_v62  ;;  %917 = vmatpush.msra.mxu2 %v4333_v62 }
 0x140   : > { %1373 = vmatpush.msrb.mxu0 %v4333_v62 }
 0x141   : > { %821 = vmatpush.msra.mxu1 %v4340_v0  ;;  %918 = vmatpush.msra.mxu2 %v4340_v0 }
 0x142   : > { %1374 = vmatpush.msrb.mxu0 %v4340_v0 }
 0x143   : > { %822 = vmatpush.msra.mxu1 %v4345_v1  ;;  %919 = vmatpush.msra.mxu2 %v4345_v1 }
 0x144   : > { %1375 = vmatpush.msrb.mxu0 %v4345_v1 }
 0x145   : > { %823 = vmatpush.msra.mxu1 %v4350_v2  ;;  %920 = vmatpush.msra.mxu2 %v4350_v2 }
 0x146   : > { %1376 = vmatpush.msrb.mxu0 %v4350_v2  ;;  %3443 = vmatmul.msk.f32.vlgmr.msra.gmra.mxu1 %vm770_vm2, %v759_v3  ;;  %v3535_v3 = vld [vmem:[%s5431_s1 + $0x118] sm:$0xff] }
 0x147   : > { %3466 = vmatmul.msk.f32.vlgmr.msra.gmra.mxu2 %vm770_vm2, %v3454_v4  ;;  %3510 = vmatpush.msk.msrb.mxu1 %vm804_vm1, %v4258_v38  ;;  %v859_v4 = vld [vmem:[#allocation5 + $0x8] sm:$0xff] }
 0x148   : > { %3612 = vmatpush.msk.msra.mxu0 %vm804_vm1, %v4258_v38  ;;  %1088 = vmatpush.msrb.mxu3 %v859_v4 }
 0x149   : > { %1170 = vmatpush.msrb.mxu1 %v4261_v40  ;;  %3545 = vmatmul.msk.f32.vlgmr.msrb.gmra.mxu0 %vm770_vm2, %v3533_v5  ;;  %v1221_v5 = vld [vmem:[#allocation5 + $0x28] sm:$0xff] }
 0x14a   : > { %1746 = vmatpush.msra.mxu0 %v4261_v40  ;;  %1269 = vmatpush.msrb.mxu2 %v1221_v5 }
 0x14b   : > { %1171 = vmatpush.msrb.mxu1 %v4270_v42 }
 0x14c   : > { %1747 = vmatpush.msra.mxu0 %v4270_v42 }
 0x14d   : > { %1172 = vmatpush.msrb.mxu1 %v4276_v44 }
 0x14e   : > { %1748 = vmatpush.msra.mxu0 %v4276_v44  ;;  %3444 = vmatmul.msk.f32.gmra.mxu1 %vm770_vm2, %v760_v6 }
 0x14f   : > { %3467 = vmatmul.msk.f32.gmra.mxu2 %vm770_vm2, %v3455_v7  ;;  %1173 = vmatpush.msrb.mxu1 %v4282_v46  ;;  %v3567_v7 = vld [vmem:[%s5431_s1 + $0x160] sm:$0xff] }
 0x150   : > { %1749 = vmatpush.msra.mxu0 %v4282_v46 }
 0x151   : > { %1174 = vmatpush.msrb.mxu1 %v4288_v48  ;;  %3546 = vmatmul.msk.f32.gmra.mxu0 %vm770_vm2, %v3534_v57 }
 0x152   : > { %1750 = vmatpush.msra.mxu0 %v4288_v48 }
 0x153   : > { %1175 = vmatpush.msrb.mxu1 %v4294_v50 }
 0x154   : > { %1751 = vmatpush.msra.mxu0 %v4294_v50 }
 0x155   : > { %1176 = vmatpush.msrb.mxu1 %v4300_v52 }
 0x156   : > { %1752 = vmatpush.msra.mxu0 %v4300_v52  ;;  %3445 = vmatmul.msk.f32.gmra.mxu1 %vm770_vm2, %v761_v8 }
 0x157   : > { %3468 = vmatmul.msk.f32.gmra.mxu2 %vm770_vm2, %v3456_v9  ;;  %1177 = vmatpush.msrb.mxu1 %v4306_v54  ;;  %v3536_v9 = vld [vmem:[%s5431_s1 + $0x120] sm:$0xff] }
 0x158   : > { %1753 = vmatpush.msra.mxu0 %v4306_v54 }
 0x159   : > { %1178 = vmatpush.msrb.mxu1 %v4312_v56  ;;  %3547 = vmatmul.msk.f32.gmra.mxu0 %vm770_vm2, %v3535_v3  ;;  %v3607_v3 = vld [vmem:[%s5431_s1 + $0x1e8] sm:$0xff] }
 0x15a   : > { %1754 = vmatpush.msra.mxu0 %v4312_v56 }
 0x15b   : > { %1179 = vmatpush.msrb.mxu1 %v4319_v58 }
 0x15c   : > { %1755 = vmatpush.msra.mxu0 %v4319_v58 }
 0x15d   : > { %1180 = vmatpush.msrb.mxu1 %v4326_v60 }
 0x15e   : > { %1756 = vmatpush.msra.mxu0 %v4326_v60  ;;  %3446 = vmatmul.msk.f32.gmra.mxu1 %vm770_vm2, %v762_v10 }
 0x15f   : > { %3469 = vmatmul.msk.f32.gmra.mxu2 %vm770_vm2, %v3457_v11  ;;  %1181 = vmatpush.msrb.mxu1 %v4333_v62 }
 0x160   : > { %1757 = vmatpush.msra.mxu0 %v4333_v62 }
 0x161   : > { %1182 = vmatpush.msrb.mxu1 %v4340_v0  ;;  %3548 = vmatmul.msk.f32.gmra.mxu0 %vm770_vm2, %v3536_v9 }
 0x162   : > { %1758 = vmatpush.msra.mxu0 %v4340_v0 }
 0x163   : > { %1183 = vmatpush.msrb.mxu1 %v4345_v1 }
 0x164   : > { %1759 = vmatpush.msra.mxu0 %v4345_v1 }
 0x165   : > { %1184 = vmatpush.msrb.mxu1 %v4350_v2 }
 0x166   : > { %1760 = vmatpush.msra.mxu0 %v4350_v2  ;;  %3447 = vmatmul.msk.f32.gmra.mxu1 %vm770_vm2, %v763_v12  ;;  %v3568_v12 = vld [vmem:[%s5431_s1 + $0x168] sm:$0xff] }
 0x167   : > { %3578 = vmatpush.msk.msra.mxu1 %vm804_vm1, %v4258_v38  ;;  %3470 = vmatmul.msk.f32.gmra.mxu2 %vm770_vm2, %v3458_v13  ;;  %v3537_v13 = vld [vmem:[%s5431_s1 + $0x128] sm:$0xff] }
 0x168   : > { %3680 = vmatpush.msk.msrb.mxu0 %vm804_vm1, %v4258_v38 }
 0x169   : > { %1554 = vmatpush.msra.mxu1 %v4261_v40  ;;  %3549 = vmatmul.msk.f32.gmra.mxu0 %vm770_vm2, %v3537_v13  ;;  %v3609_v13 = vld [vmem:[%s5431_s1 + $0x1f8] sm:$0xff] }
 0x16a   : > { %2130 = vmatpush.msrb.mxu0 %v4261_v40 }
 0x16b   : > { %1555 = vmatpush.msra.mxu1 %v4270_v42 }
 0x16c   : > { %2131 = vmatpush.msrb.mxu0 %v4270_v42 }
 0x16d   : > { %1556 = vmatpush.msra.mxu1 %v4276_v44 }
 0x16e   : > { %2132 = vmatpush.msrb.mxu0 %v4276_v44  ;;  %3448 = vmatmul.msk.f32.gmra.mxu1 %vm770_vm2, %v764_v14  ;;  %v858_v14 = vld [vmem:[#allocation5] sm:$0xff] }
 0x16f   : > { %1557 = vmatpush.msra.mxu1 %v4282_v46  ;;  %3471 = vmatmul.msk.f32.gmra.mxu2 %vm770_vm2, %v3459_v15  ;;  %v1220_v15 = vld [vmem:[#allocation5 + $0x20] sm:$0xff] }
 0x170   : > { %2133 = vmatpush.msrb.mxu0 %v4282_v46  ;;  %1089 = vmatpush.msrb.mxu3 %v858_v14 }
 0x171   : > { %1558 = vmatpush.msra.mxu1 %v4288_v48  ;;  %1270 = vmatpush.msrb.mxu2 %v1220_v15  ;;  %v3610_v15 = vld [vmem:[%s5431_s1 + $0x200] sm:$0xff] }
 0x172   : > { %2134 = vmatpush.msrb.mxu0 %v4288_v48 }
 0x173   : > { %1559 = vmatpush.msra.mxu1 %v4294_v50 }
 0x174   : > { %2135 = vmatpush.msrb.mxu0 %v4294_v50 }
 0x175   : > { %1560 = vmatpush.msra.mxu1 %v4300_v52 }
 0x176   : > { %2136 = vmatpush.msrb.mxu0 %v4300_v52  ;;  %3449 = vmatmul.msk.f32.gmra.mxu1 %vm770_vm2, %v765_v16  ;;  %v3541_v16 = vld [vmem:[%s5431_s1 + $0x148] sm:$0xff] }
 0x177   : > { %1561 = vmatpush.msra.mxu1 %v4306_v54  ;;  %3472 = vmatmul.msk.f32.gmra.mxu2 %vm770_vm2, %v3460_v17  ;;  %v3573_v17 = vld [vmem:[%s5431_s1 + $0x190] sm:$0xff] }
 0x178   : > { %2137 = vmatpush.msrb.mxu0 %v4306_v54 }
 0x179   : > { %1562 = vmatpush.msra.mxu1 %v4312_v56 }
 0x17a   : > { %2138 = vmatpush.msrb.mxu0 %v4312_v56 }
 0x17b   : > { %1563 = vmatpush.msra.mxu1 %v4319_v58 }
 0x17c   : > { %2139 = vmatpush.msrb.mxu0 %v4319_v58 }
 0x17d   : > { %1564 = vmatpush.msra.mxu1 %v4326_v60 }
 0x17e   : > { %2140 = vmatpush.msrb.mxu0 %v4326_v60  ;;  %3450 = vmatmul.msk.f32.gmra.mxu1 %vm770_vm2, %v766_v18  ;;  %v3542_v18 = vld [vmem:[%s5431_s1 + $0x150] sm:$0xff] }
 0x17f   : > { %1565 = vmatpush.msra.mxu1 %v4333_v62  ;;  %3473 = vmatmul.msk.f32.gmra.mxu2 %vm770_vm2, %v3461_v19 }
 0x180   : > { %2141 = vmatpush.msrb.mxu0 %v4333_v62 }
 0x181   : > { %1566 = vmatpush.msra.mxu1 %v4340_v0 }
 0x182   : > { %2142 = vmatpush.msrb.mxu0 %v4340_v0 }
 0x183   : > { %1567 = vmatpush.msra.mxu1 %v4345_v1 }
 0x184   : > { %2143 = vmatpush.msrb.mxu0 %v4345_v1 }
 0x185   : > { %1568 = vmatpush.msra.mxu1 %v4350_v2 }
 0x186   : > { %2144 = vmatpush.msrb.mxu0 %v4350_v2  ;;  %3451 = vmatmul.msk.f32.gmra.mxu1 %vm770_vm2, %v767_v20  ;;  %v3574_v20 = vld [vmem:[%s5431_s1 + $0x198] sm:$0xff] }
 0x187   : > { %3474 = vmatmul.msk.f32.gmra.mxu2 %vm770_vm2, %v3462_v21  ;;  %v3543_v21 = vld [vmem:[%s5431_s1 + $0x158] sm:$0x1] }
 0x18e   : > { %3452 = vmatmul.msk.f32.gmra.mxu1 %vm770_vm2, %v768_v22 }
 0x18f   : > { %3475 = vmatmul.msk.f32.gmra.mxu2 %vm770_vm2, %v3463_v23  ;;  %v3575_v23 = vld [vmem:[%s5431_s1 + $0x1a0] sm:$0xff] }
 0x196   : > { %3453 = vmatmul.msk.f32.gmra.mxu1 %vm770_vm2, %v769_v24  ;;  %v3601_v24 = vld [vmem:[%s5431_s1 + $0x1b8] sm:$0xff] }
 0x197   : > { %3476 = vmatmul.msk.f32.gmra.mxu2 %vm770_vm2, %v3464_v25 }
 0x19e   : > { %3511 = vmatmul.msk.f32.vlgmr.msrb.gmra.mxu1 %vm770_vm2, %v3499_v26  ;;  %v3576_v26 = vld [vmem:[%s5431_s1 + $0x1a8] sm:$0xff] }
 0x19f   : > { %3646 = vmatpush.msk.msrb.mxu1 %vm804_vm1, %v4258_v38 }
 0x1a1   : > { %1938 = vmatpush.msrb.mxu1 %v4261_v40 }
 0x1a3   : > { %1939 = vmatpush.msrb.mxu1 %v4270_v42 }
 0x1a5   : > { %1940 = vmatpush.msrb.mxu1 %v4276_v44 }
 0x1a6   : > { %3512 = vmatmul.msk.f32.gmra.mxu1 %vm770_vm2, %v3500_v27  ;;  %v3602_v27 = vld [vmem:[%s5431_s1 + $0x1c0] sm:$0xff] }
 0x1a7   : > { %1941 = vmatpush.msrb.mxu1 %v4282_v46 }
 0x1a9   : > { %1942 = vmatpush.msrb.mxu1 %v4288_v48 }
 0x1ab   : > { %1943 = vmatpush.msrb.mxu1 %v4294_v50 }
 0x1ad   : > { %1944 = vmatpush.msrb.mxu1 %v4300_v52 }
 0x1ae   : > { %3513 = vmatmul.msk.f32.gmra.mxu1 %vm770_vm2, %v3501_v30  ;;  %v3603_v30 = vld [vmem:[%s5431_s1 + $0x1c8] sm:$0xff] }
 0x1af   : > { %1945 = vmatpush.msrb.mxu1 %v4306_v54 }
 0x1b1   : > { %1946 = vmatpush.msrb.mxu1 %v4312_v56 }
 0x1b3   : > { %1947 = vmatpush.msrb.mxu1 %v4319_v58 }
 0x1b5   : > { %1948 = vmatpush.msrb.mxu1 %v4326_v60 }
 0x1b6   : > { %3514 = vmatmul.msk.f32.gmra.mxu1 %vm770_vm2, %v3502_v31  ;;  %v1413_v31 = vld [vmem:[#allocation5 + $0x38] sm:$0xff] }
 0x1b7   : > { %1949 = vmatpush.msrb.mxu1 %v4333_v62 }
 0x1b9   : > { %1950 = vmatpush.msrb.mxu1 %v4340_v0 }
 0x1bb   : > { %1951 = vmatpush.msrb.mxu1 %v4345_v1 }
 0x1bd   : > { %1952 = vmatpush.msrb.mxu1 %v4350_v2 }
 0x1be   : > { %3515 = vmatmul.msk.f32.gmra.mxu1 %vm770_vm2, %v3503_v32  ;;  %v1605_v32 = vld [vmem:[#allocation5 + $0x48] sm:$0xff] }
 0x1bf   : > { %1653 = vmatpush.msra.mxu2 %v1605_v32 }
 0x1c3   : > { %v4555_v33 = vpop.f32.mrf.mxu1 }
 0x1c6   : > { %3516 = vmatmul.msk.f32.gmra.mxu1 %vm770_vm2, %v3504_v34  ;;  %v3635_v34 = vld [vmem:[%s5431_s1 + $0x210] sm:$0xff] }
 0x1ca   : > { %v922_v35 = vpop.f32.mrf.mxu2 }
 0x1cb   : > { %3477 = vmatmul.msk.f32.vlgmr.msra.gmra.mxu3 %vm629_vm0, %v922_v35  ;;  %v4562_v36 = vpop.f32.mrf.mxu1  ;;  %v3604_v35 = vld [vmem:[%s5431_s1 + $0x1d0] sm:$0xff] }
 0x1cc   : > { %1461 = vmatpush.msra.mxu3 %v1413_v31 }
 0x1ce   : > { %3517 = vmatmul.msk.f32.gmra.mxu1 %vm770_vm2, %v3505_v37 }
 0x1d2   : > { %v925_v39 = vpop.f32.mrf.mxu2 }
 0x1d3   : > { %3478 = vmatmul.msk.f32.gmra.mxu3 %vm629_vm0, %v925_v39  ;;  %v4569_v41 = vpop.f32.mrf.mxu1  ;;  %v3636_v39 = vld [vmem:[%s5431_s1 + $0x218] sm:$0xff] }
 0x1d6   : > { %3518 = vmatmul.msk.f32.gmra.mxu1 %vm770_vm2, %v3506_v43 }
 0x1da   : > { %v928_v45 = vpop.f32.mrf.mxu2 }
 0x1db   : > { %3479 = vmatmul.msk.f32.gmra.mxu3 %vm629_vm0, %v928_v45  ;;  %v4576_v47 = vpop.f32.mrf.mxu1  ;;  %v1412_v45 = vld [vmem:[#allocation5 + $0x30] sm:$0xff] }
 0x1dc   : > { %1462 = vmatpush.msra.mxu3 %v1412_v45 }
 0x1de   : > { %3519 = vmatmul.msk.f32.gmra.mxu1 %vm770_vm2, %v3507_v49 }
 0x1e2   : > { %v931_v51 = vpop.f32.mrf.mxu2 }
 0x1e3   : > { %3480 = vmatmul.msk.f32.gmra.mxu3 %vm629_vm0, %v931_v51  ;;  %v4586_v55 = vpop.f32.mrf.mxu1  ;;  %v3637_v51 = vld [vmem:[%s5431_s1 + $0x220] sm:$0xff] }
 0x1e6   : > { %3520 = vmatmul.msk.f32.gmra.mxu1 %vm770_vm2, %v3508_v53  ;;  %v1604_v53 = vld [vmem:[#allocation5 + $0x40] sm:$0xff] }
 0x1e7   : > { %1654 = vmatpush.msra.mxu2 %v1604_v53  ;;  %v1796_v53 = vld [vmem:[#allocation5 + $0x50] sm:$0xff] }
 0x1ea   : > { %v934_v59 = vpop.f32.mrf.mxu2 }
 0x1eb   : > { %3481 = vmatmul.msk.f32.gmra.mxu3 %vm629_vm0, %v934_v59  ;;  %v4597_v63 = vpop.f32.mrf.mxu1 }
 0x1ee   : > { %3521 = vmatmul.msk.f32.gmra.mxu1 %vm770_vm2, %v3509_v61 }
 0x1f2   : > { %v937_v6 = vpop.f32.mrf.mxu2 }
 0x1f3   : > { %3482 = vmatmul.msk.f32.gmra.mxu3 %vm629_vm0, %v937_v6  ;;  %v4608_v8 = vpop.f32.mrf.mxu1 }
 0x1f6   : > { %3579 = vmatmul.msk.f32.vlgmr.msra.gmra.mxu1 %vm770_vm2, %v3567_v7  ;;  %v3639_v7 = vld [vmem:[%s5431_s1 + $0x230] sm:$0xff] }
 0x1f7   : > { %3714 = vmatpush.msk.msra.mxu1 %vm804_vm1, %v4258_v38 }
 0x1f9   : > { %2322 = vmatpush.msra.mxu1 %v4261_v40 }
 0x1fa   : > { %v940_v10 = vpop.f32.mrf.mxu2 }
 0x1fb   : > { %3483 = vmatmul.msk.f32.gmra.mxu3 %vm629_vm0, %v940_v10  ;;  %2323 = vmatpush.msra.mxu1 %v4270_v42  ;;  %v4620_v11 = vpop.f32.mrf.mxu1  ;;  %v3569_v42 = vld [vmem:[%s5431_s1 + $0x170] sm:$0xff] }
 0x1fd   : > { %2324 = vmatpush.msra.mxu1 %v4276_v44  ;;  %v3538_v44 = vld [vmem:[%s5431_s1 + $0x130] sm:$0xff] }
 0x1fe   : > { %3580 = vmatmul.msk.f32.gmra.mxu1 %vm770_vm2, %v3568_v12  ;;  %3550 = vmatmul.msk.f32.gmra.mxu0 %vm770_vm2, %v3538_v44  ;;  %v3640_v12 = vld [vmem:[%s5431_s1 + $0x238] sm:$0xff] }
 0x1ff   : > { %2325 = vmatpush.msra.mxu1 %v4282_v46 }
 0x201   : > { %2326 = vmatpush.msra.mxu1 %v4288_v48 }
 0x202   : > { %v943_v38 = vpop.f32.mrf.mxu2 }
 0x203   : > { %3484 = vmatmul.msk.f32.gmra.mxu3 %vm629_vm0, %v943_v38  ;;  %2327 = vmatpush.msra.mxu1 %v4294_v50  ;;  %v4635_v40 = vpop.f32.mrf.mxu1  ;;  %v3570_v50 = vld [vmem:[%s5431_s1 + $0x178] sm:$0xff] }
 0x205   : > { %2328 = vmatpush.msra.mxu1 %v4300_v52  ;;  %v3539_v52 = vld [vmem:[%s5431_s1 + $0x138] sm:$0xff] }
 0x206   : > { %3581 = vmatmul.msk.f32.gmra.mxu1 %vm770_vm2, %v3569_v42  ;;  %3551 = vmatmul.msk.f32.gmra.mxu0 %vm770_vm2, %v3539_v52  ;;  %v3641_v42 = vld [vmem:[%s5431_s1 + $0x240] sm:$0xff]  ;;  %v3611_v52 = vld [vmem:[%s5431_s1 + $0x208] sm:$0x1] }
 0x207   : > { %2329 = vmatpush.msra.mxu1 %v4306_v54 }
 0x209   : > { %2330 = vmatpush.msra.mxu1 %v4312_v56 }
 0x20a   : > { %v946_v46 = vpop.f32.mrf.mxu2 }
 0x20b   : > { %3485 = vmatmul.msk.f32.gmra.mxu3 %vm629_vm0, %v946_v46  ;;  %2331 = vmatpush.msra.mxu1 %v4319_v58  ;;  %v4650_v48 = vpop.f32.mrf.mxu1  ;;  %v3571_v58 = vld [vmem:[%s5431_s1 + $0x180] sm:$0xff] }
 0x20d   : > { %2332 = vmatpush.msra.mxu1 %v4326_v60  ;;  %v3540_v60 = vld [vmem:[%s5431_s1 + $0x140] sm:$0xff] }
 0x20e   : > { %3582 = vmatmul.msk.f32.gmra.mxu1 %vm770_vm2, %v3570_v50  ;;  %3552 = vmatmul.msk.f32.gmra.mxu0 %vm770_vm2, %v3540_v60  ;;  %v3642_v50 = vld [vmem:[%s5431_s1 + $0x248] sm:$0xff]  ;;  %v3643_v60 = vld [vmem:[%s5431_s1 + $0x250] sm:$0xff] }
 0x20f   : > { %2333 = vmatpush.msra.mxu1 %v4333_v62 }
 0x211   : > { %2334 = vmatpush.msra.mxu1 %v4340_v0 }
 0x212   : > { %v949_v54 = vpop.f32.mrf.mxu2 }
 0x213   : > { %3486 = vmatmul.msk.f32.gmra.mxu3 %vm629_vm0, %v949_v54  ;;  %2335 = vmatpush.msra.mxu1 %v4345_v1  ;;  %v4665_v56 = vpop.f32.mrf.mxu1  ;;  %v3572_v1 = vld [vmem:[%s5431_s1 + $0x188] sm:$0xff] }
 0x215   : > { %2336 = vmatpush.msra.mxu1 %v4350_v2 }
 0x216   : > { %3583 = vmatmul.msk.f32.gmra.mxu1 %vm770_vm2, %v3571_v58  ;;  %3553 = vmatmul.msk.f32.gmra.mxu0 %vm770_vm2, %v3541_v16 }
 0x21a   : > { %v952_v62 = vpop.f32.mrf.mxu2 }
 0x21b   : > { %3487 = vmatmul.msk.f32.gmra.mxu3 %vm629_vm0, %v952_v62  ;;  %v1186_v0 = vpop.f32.mrf.mxu1  ;;  %v3669_v62 = vld [vmem:[%s5431_s1 + $0x268] sm:$0xff] }
 0x21c   : > { %3522 = vmatmul.msk.f32.vlgmr.msrb.gmra.mxu2 %vm629_vm0, %v1186_v0 }
 0x21e   : > { %3584 = vmatmul.msk.f32.gmra.mxu1 %vm770_vm2, %v3572_v1  ;;  %3554 = vmatmul.msk.f32.gmra.mxu0 %vm770_vm2, %v3542_v18 }
 0x223   : > { %3488 = vmatmul.msk.f32.vlgmr.msrb.gmra.mxu3 %vm629_vm0, %v4555_v33  ;;  %v1189_v2 = vpop.f32.mrf.mxu1 }
 0x224   : > { %3523 = vmatmul.msk.f32.gmra.mxu2 %vm629_vm0, %v1189_v2  ;;  %v3644_v2 = vld [vmem:[%s5431_s1 + $0x258] sm:$0xff] }
 0x226   : > { %3585 = vmatmul.msk.f32.gmra.mxu1 %vm770_vm2, %v3573_v17  ;;  %3555 = vmatmul.msk.f32.gmra.mxu0 %vm770_vm2, %v3543_v21  ;;  %v3670_v17 = vld [vmem:[%s5431_s1 + $0x270] sm:$0xff]  ;;  %v3645_v21 = vld [vmem:[%s5431_s1 + $0x260] sm:$0x1] }
 0x22b   : > { %3489 = vmatmul.msk.f32.gmra.mxu3 %vm629_vm0, %v4562_v36  ;;  %v1192_v19 = vpop.f32.mrf.mxu1 }
 0x22c   : > { %3524 = vmatmul.msk.f32.gmra.mxu2 %vm629_vm0, %v1192_v19 }
 0x22e   : > { %3586 = vmatmul.msk.f32.gmra.mxu1 %vm770_vm2, %v3574_v20  ;;  %3613 = vmatmul.msk.f32.vlgmr.msra.gmra.mxu0 %vm770_vm2, %v3601_v24 }
 0x233   : > { %3490 = vmatmul.msk.f32.gmra.mxu3 %vm629_vm0, %v4569_v41  ;;  %v1195_v22 = vpop.f32.mrf.mxu1  ;;  %v3605_v41 = vld [vmem:[%s5431_s1 + $0x1d8] sm:$0xff] }
 0x234   : > { %3525 = vmatmul.msk.f32.gmra.mxu2 %vm629_vm0, %v1195_v22  ;;  %v3671_v22 = vld [vmem:[%s5431_s1 + $0x278] sm:$0xff] }
 0x236   : > { %3587 = vmatmul.msk.f32.gmra.mxu1 %vm770_vm2, %v3575_v23  ;;  %3614 = vmatmul.msk.f32.gmra.mxu0 %vm770_vm2, %v3602_v27 }
 0x23b   : > { %3491 = vmatmul.msk.f32.gmra.mxu3 %vm629_vm0, %v4576_v47  ;;  %v1198_v25 = vpop.f32.mrf.mxu1  ;;  %v1378_v47 = vpop.f32.mrf.mxu0 }
 0x23c   : > { %3526 = vmatmul.msk.f32.gmra.mxu2 %vm629_vm0, %v1198_v25  ;;  %v1797_v25 = vld [vmem:[#allocation5 + $0x58] sm:$0xff] }
 0x23d   : > { %1845 = vmatpush.msrb.mxu3 %v1797_v25 }
 0x23e   : > { %3588 = vmatmul.msk.f32.gmra.mxu1 %vm770_vm2, %v3576_v26  ;;  %3615 = vmatmul.msk.f32.gmra.mxu0 %vm770_vm2, %v3603_v30  ;;  %v1989_v26 = vld [vmem:[#allocation5 + $0x68] sm:$0xff]  ;;  %v3672_v30 = vld [vmem:[%s5431_s1 + $0x280] sm:$0xff] }
 0x23f   : > { %2037 = vmatpush.msrb.mxu2 %v1989_v26  ;;  %1846 = vmatpush.msrb.mxu3 %v1796_v53 }
 0x243   : > { %3492 = vmatmul.msk.f32.gmra.mxu3 %vm629_vm0, %v4586_v55  ;;  %v1201_v28 = vpop.f32.mrf.mxu1  ;;  %v3606_v55 = vld [vmem:[%s5431_s1 + $0x1e0] sm:$0xff]  ;;  %v1381_v59 = vpop.f32.mrf.mxu0 }
 0x244   : > { %3527 = vmatmul.msk.f32.gmra.mxu2 %vm629_vm0, %v1201_v28 }
 0x246   : > { %3589 = vmatmul.msk.f32.gmra.mxu1 %vm770_vm2, %v3577_v29  ;;  %3616 = vmatmul.msk.f32.gmra.mxu0 %vm770_vm2, %v3604_v35  ;;  %v3703_v29 = vld [vmem:[%s5431_s1 + $0x2c0] sm:$0xff] }
 0x24b   : > { %3493 = vmatmul.msk.f32.gmra.mxu3 %vm629_vm0, %v4597_v63  ;;  %v1204_v33 = vpop.f32.mrf.mxu1  ;;  %v3638_v63 = vld [vmem:[%s5431_s1 + $0x228] sm:$0xff]  ;;  %v1384_v5 = vpop.f32.mrf.mxu0 }
 0x24c   : > { %3528 = vmatmul.msk.f32.gmra.mxu2 %vm629_vm0, %v1204_v33 }
 0x24e   : > { %v4751_v36 = vpop.f32.mrf.mxu3  ;;  %3647 = vmatmul.msk.f32.vlgmr.msrb.gmra.mxu1 %vm770_vm2, %v3635_v34  ;;  %3617 = vmatmul.msk.f32.gmra.mxu0 %vm770_vm2, %v3605_v41  ;;  %v3673_v41 = vld [vmem:[%s5431_s1 + $0x288] sm:$0xff] }
 0x253   : > { %3494 = vmatmul.msk.f32.gmra.mxu3 %vm629_vm0, %v4608_v8  ;;  %v1207_v37 = vpop.f32.mrf.mxu1  ;;  %v3608_v8 = vld [vmem:[%s5431_s1 + $0x1f0] sm:$0xff]  ;;  %v1387_v10 = vpop.f32.mrf.mxu0 }
 0x254   : > { %3529 = vmatmul.msk.f32.gmra.mxu2 %vm629_vm0, %v1207_v37 }
 0x256   : > { %v4764_v43 = vpop.f32.mrf.mxu3  ;;  %3648 = vmatmul.msk.f32.gmra.mxu1 %vm770_vm2, %v3636_v39  ;;  %3618 = vmatmul.msk.f32.gmra.mxu0 %vm770_vm2, %v3606_v55  ;;  %v3704_v39 = vld [vmem:[%s5431_s1 + $0x2c8] sm:$0xff] }
 0x25b   : > { %3495 = vmatmul.msk.f32.gmra.mxu3 %vm629_vm0, %v4620_v11  ;;  %v1210_v49 = vpop.f32.mrf.mxu1  ;;  %v1390_v38 = vpop.f32.mrf.mxu0 }
 0x25c   : > { %3530 = vmatmul.msk.f32.gmra.mxu2 %vm629_vm0, %v1210_v49 }
 0x25e   : > { %v4777_v57 = vpop.f32.mrf.mxu3  ;;  %3649 = vmatmul.msk.f32.gmra.mxu1 %vm770_vm2, %v3637_v51  ;;  %3619 = vmatmul.msk.f32.gmra.mxu0 %vm770_vm2, %v3607_v3 }
 0x263   : > { %3496 = vmatmul.msk.f32.gmra.mxu3 %vm629_vm0, %v4635_v40  ;;  %v1213_v61 = vpop.f32.mrf.mxu1 }
 0x264   : > { %3531 = vmatmul.msk.f32.gmra.mxu2 %vm629_vm0, %v1213_v61  ;;  %v1988_v61 = vld [vmem:[#allocation5 + $0x60] sm:$0xff] }
 0x265   : > { %2038 = vmatpush.msrb.mxu2 %v1988_v61 }
 0x266   : > { %v4790_v4 = vpop.f32.mrf.mxu3  ;;  %3650 = vmatmul.msk.f32.gmra.mxu1 %vm770_vm2, %v3638_v63  ;;  %3620 = vmatmul.msk.f32.gmra.mxu0 %vm770_vm2, %v3608_v8  ;;  %v3674_v63 = vld [vmem:[%s5431_s1 + $0x290] sm:$0xff] }
 0x26b   : > { %3497 = vmatmul.msk.f32.gmra.mxu3 %vm629_vm0, %v4650_v48  ;;  %v1216_v6 = vpop.f32.mrf.mxu1 }
 0x26c   : > { %3532 = vmatmul.msk.f32.gmra.mxu2 %vm629_vm0, %v1216_v6 }
 0x26e   : > { %v4803_v9 = vpop.f32.mrf.mxu3  ;;  %3651 = vmatmul.msk.f32.gmra.mxu1 %vm770_vm2, %v3639_v7  ;;  %3621 = vmatmul.msk.f32.gmra.mxu0 %vm770_vm2, %v3609_v13 }
 0x273   : > { %3498 = vmatmul.msk.f32.gmra.mxu3 %vm629_vm0, %v4665_v56  ;;  %v1570_v11 = vpop.f32.mrf.mxu1 }
 0x274   : > { %3590 = vmatmul.msk.f32.vlgmr.msra.gmra.mxu2 %vm629_vm0, %v1570_v11  ;;  %v3675_v11 = vld [vmem:[%s5431_s1 + $0x298] sm:$0xff] }
 0x276   : > { %v4816_v14 = vpop.f32.mrf.mxu3  ;;  %3652 = vmatmul.msk.f32.gmra.mxu1 %vm770_vm2, %v3640_v12  ;;  %3622 = vmatmul.msk.f32.gmra.mxu0 %vm770_vm2, %v3610_v15  ;;  %v3707_v15 = vld [vmem:[%s5431_s1 + $0x2e0] sm:$0xff] }
 0x27b   : > { %3556 = vmatmul.msk.f32.vlgmr.msra.gmra.mxu3 %vm629_vm0, %v1378_v47  ;;  %v1573_v40 = vpop.f32.mrf.mxu1  ;;  %v1393_v46 = vpop.f32.mrf.mxu0 }
 0x27c   : > { %3591 = vmatmul.msk.f32.gmra.mxu2 %vm629_vm0, %v1573_v40 }
 0x27e   : > { %v4828_v44 = vpop.f32.mrf.mxu3  ;;  %3653 = vmatmul.msk.f32.gmra.mxu1 %vm770_vm2, %v3641_v42  ;;  %3623 = vmatmul.msk.f32.gmra.mxu0 %vm770_vm2, %v3611_v52 }
 0x283   : > { %3557 = vmatmul.msk.f32.gmra.mxu3 %vm629_vm0, %v1381_v59  ;;  %v1576_v48 = vpop.f32.mrf.mxu1  ;;  %v1396_v56 = vpop.f32.mrf.mxu0  ;;  %v3705_v59 = vld [vmem:[%s5431_s1 + $0x2d0] sm:$0xff] }
 0x284   : > { %3592 = vmatmul.msk.f32.gmra.mxu2 %vm629_vm0, %v1576_v48 }
 0x286   : > { %v4840_v54 = vpop.f32.mrf.mxu3  ;;  %3654 = vmatmul.msk.f32.gmra.mxu1 %vm770_vm2, %v3642_v50  ;;  %3681 = vmatmul.msk.f32.vlgmr.msrb.gmra.mxu0 %vm770_vm2, %v3669_v62  ;;  %v3677_v62 = vld [vmem:[%s5431_s1 + $0x2a8] sm:$0xff] }
 0x28b   : > { %3558 = vmatmul.msk.f32.gmra.mxu3 %vm629_vm0, %v1384_v5  ;;  %v1579_v58 = vpop.f32.mrf.mxu1  ;;  %v1399_v1 = vpop.f32.mrf.mxu0 }
 0x28c   : > { %3593 = vmatmul.msk.f32.gmra.mxu2 %vm629_vm0, %v1579_v58 }
 0x28e   : > { %v4852_v0 = vpop.f32.mrf.mxu3  ;;  %3655 = vmatmul.msk.f32.gmra.mxu1 %vm770_vm2, %v3643_v60  ;;  %3682 = vmatmul.msk.f32.gmra.mxu0 %vm770_vm2, %v3670_v17  ;;  %v3708_v60 = vld [vmem:[%s5431_s1 + $0x2e8] sm:$0xff] }
 0x293   : > { %3559 = vmatmul.msk.f32.gmra.mxu3 %vm629_vm0, %v1387_v10  ;;  %v1582_v16 = vpop.f32.mrf.mxu1  ;;  %v1402_v19 = vpop.f32.mrf.mxu0  ;;  %v3706_v10 = vld [vmem:[%s5431_s1 + $0x2d8] sm:$0xff] }
 0x294   : > { %3594 = vmatmul.msk.f32.gmra.mxu2 %vm629_vm0, %v1582_v16 }
 0x296   : > { %v4864_v18 = vpop.f32.mrf.mxu3  ;;  %3656 = vmatmul.msk.f32.gmra.mxu1 %vm770_vm2, %v3644_v2  ;;  %3683 = vmatmul.msk.f32.gmra.mxu0 %vm770_vm2, %v3671_v22 }
 0x29b   : > { %3560 = vmatmul.msk.f32.gmra.mxu3 %vm629_vm0, %v1390_v38  ;;  %v1585_v20 = vpop.f32.mrf.mxu1  ;;  %v1405_v27 = vpop.f32.mrf.mxu0 }
 0x29c   : > { %3595 = vmatmul.msk.f32.gmra.mxu2 %vm629_vm0, %v1585_v20  ;;  %v3709_v20 = vld [vmem:[%s5431_s1 + $0x2f0] sm:$0xff] }
 0x29e   : > { %v4876_v23 = vpop.f32.mrf.mxu3  ;;  %3657 = vmatmul.msk.f32.gmra.mxu1 %vm770_vm2, %v3645_v21  ;;  %3684 = vmatmul.msk.f32.gmra.mxu0 %vm770_vm2, %v3672_v30  ;;  %v3678_v21 = vld [vmem:[%s5431_s1 + $0x2b0] sm:$0xff] }
 0x29f   : > { %v1272_v24 = vpop.f32.mrf.mxu2 }
 0x2a3   : > { %3561 = vmatmul.msk.f32.gmra.mxu3 %vm629_vm0, %v1393_v46  ;;  %v1588_v28 = vpop.f32.mrf.mxu1  ;;  %v1408_v35 = vpop.f32.mrf.mxu0  ;;  %v3676_v46 = vld [vmem:[%s5431_s1 + $0x2a0] sm:$0xff] }
 0x2a4   : > { %3596 = vmatmul.msk.f32.gmra.mxu2 %vm629_vm0, %v1588_v28  ;;  %v3710_v28 = vld [vmem:[%s5431_s1 + $0x2f8] sm:$0xff] }
 0x2a6   : > { %v1091_v31 = vpop.f32.mrf.mxu3  ;;  %3715 = vmatmul.msk.f32.vlgmr.msra.gmra.mxu1 %vm770_vm2, %v3703_v29  ;;  %3685 = vmatmul.msk.f32.gmra.mxu0 %vm770_vm2, %v3673_v41  ;;  %v3679_v29 = vld [vmem:[%s5431_s1 + $0x2b8] sm:$0x1] }
 0x2a7   : > { %v1092_v32 = vadd.f32 %v1091_v31, %v4751_v36  ;;  %v1275_v33 = vpop.f32.mrf.mxu2 }
 0x2a9   : > { %v4890_v34 = vadd.f32 %v1272_v24, %v1092_v32 }
 0x2ab   : > { %3562 = vmatmul.msk.f32.gmra.mxu3 %vm629_vm0, %v1396_v56  ;;  %v1591_v37 = vpop.f32.mrf.mxu1  ;;  %v1762_v51 = vpop.f32.mrf.mxu0 }
 0x2ac   : > { %3597 = vmatmul.msk.f32.gmra.mxu2 %vm629_vm0, %v1591_v37  ;;  %v3711_v37 = vld [vmem:[%s5431_s1 + $0x300] sm:$0xff] }
 0x2ae   : > { %v1094_v36 = vpop.f32.mrf.mxu3  ;;  %3716 = vmatmul.msk.f32.gmra.mxu1 %vm770_vm2, %v3704_v39  ;;  %3686 = vmatmul.msk.f32.gmra.mxu0 %vm770_vm2, %v3674_v63  ;;  %v3713_v63 = vld [vmem:[%s5431_s1 + $0x310] sm:$0x1] }
 0x2af   : > { %v1095_v45 = vadd.f32 %v1094_v36, %v4764_v43  ;;  %v1278_v47 = vpop.f32.mrf.mxu2 }
 0x2b1   : > { %v4903_v49 = vadd.f32 %v1275_v33, %v1095_v45 }
 0x2b3   : > { %3563 = vmatmul.msk.f32.gmra.mxu3 %vm629_vm0, %v1399_v1  ;;  %v1594_v55 = vpop.f32.mrf.mxu1  ;;  %v1765_v7 = vpop.f32.mrf.mxu0 }
 0x2b4   : > { %3598 = vmatmul.msk.f32.gmra.mxu2 %vm629_vm0, %v1594_v55 }
 0x2b6   : > { %v1097_v43 = vpop.f32.mrf.mxu3  ;;  %3717 = vmatmul.msk.f32.gmra.mxu1 %vm770_vm2, %v3705_v59  ;;  %3687 = vmatmul.msk.f32.gmra.mxu0 %vm770_vm2, %v3675_v11 }
 0x2b7   : > { %v1098_v3 = vadd.f32 %v1097_v43, %v4777_v57  ;;  %v1281_v5 = vpop.f32.mrf.mxu2 }
 0x2b9   : > { %v4916_v6 = vadd.f32 %v1278_v47, %v1098_v3  ;;  %v3712_v47 = vld [vmem:[%s5431_s1 + $0x308] sm:$0xff] }
 0x2bb   : > { %3564 = vmatmul.msk.f32.gmra.mxu3 %vm629_vm0, %v1402_v19  ;;  %v1597_v8 = vpop.f32.mrf.mxu1  ;;  %v1768_v40 = vpop.f32.mrf.mxu0 }
 0x2bc   : > { %3599 = vmatmul.msk.f32.gmra.mxu2 %vm629_vm0, %v1597_v8 }
 0x2be   : > { %v1100_v57 = vpop.f32.mrf.mxu3  ;;  %3718 = vmatmul.msk.f32.gmra.mxu1 %vm770_vm2, %v3706_v10  ;;  %3688 = vmatmul.msk.f32.gmra.mxu0 %vm770_vm2, %v3676_v46  ;;  %v2373_v10 = vld [vmem:[#allocation5 + $0x88] sm:$0xff] }
 0x2bf   : > { %v1101_v12 = vadd.f32 %v1100_v57, %v4790_v4  ;;  %v1284_v13 = vpop.f32.mrf.mxu2  ;;  %2421 = vmatpush.msra.mxu2 %v2373_v10 }
 0x2c1   : > { %v4929_v38 = vadd.f32 %v1281_v5, %v1101_v12 }
 0x2c3   : > { %3565 = vmatmul.msk.f32.gmra.mxu3 %vm629_vm0, %v1405_v27  ;;  %v1600_v42 = vpop.f32.mrf.mxu1  ;;  %v1771_v56 = vpop.f32.mrf.mxu0 }
 0x2c4   : > { %3600 = vmatmul.msk.f32.gmra.mxu2 %vm629_vm0, %v1600_v42 }
 0x2c6   : > { %v1103_v4 = vpop.f32.mrf.mxu3  ;;  %3719 = vmatmul.msk.f32.gmra.mxu1 %vm770_vm2, %v3707_v15  ;;  %3689 = vmatmul.msk.f32.gmra.mxu0 %vm770_vm2, %v3677_v62 }
 0x2c7   : > { %v1104_v48 = vadd.f32 %v1103_v4, %v4803_v9  ;;  %v1287_v50 = vpop.f32.mrf.mxu2 }
 0x2c9   : > { %v4942_v52 = vadd.f32 %v1284_v13, %v1104_v48 }
 0x2cb   : > { %3566 = vmatmul.msk.f32.gmra.mxu3 %vm629_vm0, %v1408_v35  ;;  %v1954_v58 = vpop.f32.mrf.mxu1  ;;  %v1774_v17 = vpop.f32.mrf.mxu0 }
 0x2cc   : > { %3658 = vmatmul.msk.f32.vlgmr.msrb.gmra.mxu2 %vm629_vm0, %v1954_v58  ;;  %v2372_v58 = vld [vmem:[#allocation5 + $0x80] sm:$0xff] }
 0x2cd   : > { %2422 = vmatpush.msra.mxu2 %v2372_v58 }
 0x2ce   : > { %v1106_v9 = vpop.f32.mrf.mxu3  ;;  %3720 = vmatmul.msk.f32.gmra.mxu1 %vm770_vm2, %v3708_v60  ;;  %3690 = vmatmul.msk.f32.gmra.mxu0 %vm770_vm2, %v3678_v21 }
 0x2cf   : > { %v1107_v1 = vadd.f32 %v1106_v9, %v4816_v14  ;;  %v1290_v16 = vpop.f32.mrf.mxu2 }
 0x2d1   : > { %v4955_v2 = vadd.f32 %v1287_v50, %v1107_v1  ;;  %v2180_v50 = vld [vmem:[#allocation5 + $0x70] sm:$0xff] }
 0x2d3   : > { %3624 = vmatmul.msk.f32.vlgmr.msrb.gmra.mxu3 %vm629_vm0, %v1762_v51  ;;  %v1957_v19 = vpop.f32.mrf.mxu1  ;;  %v1777_v26 = vpop.f32.mrf.mxu0 }
 0x2d4   : > { %3659 = vmatmul.msk.f32.gmra.mxu2 %vm629_vm0, %v1957_v19 }
 0x2d6   : > { %v1109_v14 = vpop.f32.mrf.mxu3  ;;  %3721 = vmatmul.msk.f32.gmra.mxu1 %vm770_vm2, %v3709_v20  ;;  %3691 = vmatmul.msk.f32.gmra.mxu0 %vm770_vm2, %v3679_v29 }
 0x2d7   : > { %v1110_v22 = vadd.f32 %v1109_v14, %v4828_v44  ;;  %v1293_v24 = vpop.f32.mrf.mxu2 }
 0x2d9   : > { %v4968_v25 = vadd.f32 %v1290_v16, %v1110_v22 }
 0x2db   : > { %3625 = vmatmul.msk.f32.gmra.mxu3 %vm629_vm0, %v1765_v7  ;;  %v1960_v27 = vpop.f32.mrf.mxu1  ;;  %v1780_v33 = vpop.f32.mrf.mxu0 }
 0x2dc   : > { %3660 = vmatmul.msk.f32.gmra.mxu2 %vm629_vm0, %v1960_v27 }
 0x2de   : > { %v1112_v44 = vpop.f32.mrf.mxu3  ;;  %3722 = vmatmul.msk.f32.gmra.mxu1 %vm770_vm2, %v3710_v28 }
 0x2df   : > { %v1113_v30 = vadd.f32 %v1112_v44, %v4840_v54  ;;  %v1296_v31 = vpop.f32.mrf.mxu2 }
 0x2e1   : > { %v4981_v32 = vadd.f32 %v1293_v24, %v1113_v30 }
 0x2e3   : > { %3626 = vmatmul.msk.f32.gmra.mxu3 %vm629_vm0, %v1768_v40  ;;  %v1963_v35 = vpop.f32.mrf.mxu1  ;;  %v1783_v51 = vpop.f32.mrf.mxu0 }
 0x2e4   : > { %3661 = vmatmul.msk.f32.gmra.mxu2 %vm629_vm0, %v1963_v35 }
 0x2e6   : > { %v1115_v39 = vpop.f32.mrf.mxu3  ;;  %3723 = vmatmul.msk.f32.gmra.mxu1 %vm770_vm2, %v3711_v37 }
 0x2e7   : > { %v1116_v41 = vadd.f32 %v1115_v39, %v4852_v0  ;;  %v1299_v36 = vpop.f32.mrf.mxu2 }
 0x2e9   : > { %v4990_v54 = vadd.f32 %v1296_v31, %v1116_v41 }
 0x2eb   : > { %3627 = vmatmul.msk.f32.gmra.mxu3 %vm629_vm0, %v1771_v56  ;;  %v1966_v45 = vpop.f32.mrf.mxu1  ;;  %v1786_v3 = vpop.f32.mrf.mxu0 }
 0x2ec   : > { %3662 = vmatmul.msk.f32.gmra.mxu2 %vm629_vm0, %v1966_v45 }
 0x2ee   : > { %v1118_v53 = vpop.f32.mrf.mxu3  ;;  %3724 = vmatmul.msk.f32.gmra.mxu1 %vm770_vm2, %v3712_v47 }
 0x2ef   : > { %v1119_v55 = vadd.f32 %v1118_v53, %v4864_v18  ;;  %v1302_v59 = vpop.f32.mrf.mxu2  ;;  %v2181_v18 = vld [vmem:[#allocation5 + $0x78] sm:$0xff] }
 0x2f0   : > { %2229 = vmatpush.msra.mxu3 %v2181_v18 }
 0x2f1   : > { %v4999_v0 = vadd.f32 %v1299_v36, %v1119_v55 }
 0x2f2   : > { %2230 = vmatpush.msra.mxu3 %v2180_v50 }
 0x2f3   : > { %3628 = vmatmul.msk.f32.gmra.mxu3 %vm629_vm0, %v1774_v17  ;;  %v1969_v61 = vpop.f32.mrf.mxu1  ;;  %v1789_v40 = vpop.f32.mrf.mxu0 }
 0x2f4   : > { %3663 = vmatmul.msk.f32.gmra.mxu2 %vm629_vm0, %v1969_v61 }
 0x2f6   : > { %v1121_v43 = vpop.f32.mrf.mxu3  ;;  %3725 = vmatmul.msk.f32.gmra.mxu1 %vm770_vm2, %v3713_v63 }
 0x2f7   : > { %v1122_v5 = vadd.f32 %v1121_v43, %v4876_v23  ;;  %v1656_v7 = vpop.f32.mrf.mxu2 }
 0x2f9   : > { %v5008_v8 = vadd.f32 %v1302_v59, %v1122_v5 }
 0x2fb   : > { %3629 = vmatmul.msk.f32.gmra.mxu3 %vm629_vm0, %v1777_v26  ;;  %v1972_v11 = vpop.f32.mrf.mxu1  ;;  %v1792_v56 = vpop.f32.mrf.mxu0 }
 0x2fc   : > { %3664 = vmatmul.msk.f32.gmra.mxu2 %vm629_vm0, %v1972_v11 }
 0x2fe   : > { %v1464_v57 = vpop.f32.mrf.mxu3 }
 0x2ff   : > { %v1497_v12 = vadd.f32 %v1464_v57, %v4890_v34  ;;  %v1659_v13 = vpop.f32.mrf.mxu2 }
 0x301   : > { %v5013_v42 = vadd.f32 %v1656_v7, %v1497_v12 }
 0x303   : > { %3630 = vmatmul.msk.f32.gmra.mxu3 %vm629_vm0, %v1780_v33  ;;  %v1975_v23 = vpop.f32.mrf.mxu1  ;;  %v2146_v16 = vpop.f32.mrf.mxu0 }
 0x304   : > { %3665 = vmatmul.msk.f32.gmra.mxu2 %vm629_vm0, %v1975_v23 }
 0x306   : > { %v1467_v15 = vpop.f32.mrf.mxu3 }
 0x307   : > { %v1498_v46 = vadd.f32 %v1467_v15, %v4903_v49  ;;  %v1662_v4 = vpop.f32.mrf.mxu2 }
 0x309   : > { %v5018_v48 = vadd.f32 %v1659_v13, %v1498_v46 }
 0x30b   : > { %3631 = vmatmul.msk.f32.gmra.mxu3 %vm629_vm0, %v1783_v51  ;;  %v1978_v34 = vpop.f32.mrf.mxu1  ;;  %v2149_v22 = vpop.f32.mrf.mxu0 }
 0x30c   : > { %3666 = vmatmul.msk.f32.gmra.mxu2 %vm629_vm0, %v1978_v34 }
 0x30e   : > { %v1470_v60 = vpop.f32.mrf.mxu3 }
 0x30f   : > { %v1499_v62 = vadd.f32 %v1470_v60, %v4916_v6  ;;  %v1665_v9 = vpop.f32.mrf.mxu2 }
 0x311   : > { %v5023_v1 = vadd.f32 %v1662_v4, %v1499_v62 }
 0x313   : > { %3632 = vmatmul.msk.f32.gmra.mxu3 %vm629_vm0, %v1786_v3  ;;  %v1981_v49 = vpop.f32.mrf.mxu1  ;;  %v2152_v30 = vpop.f32.mrf.mxu0 }
 0x314   : > { %3667 = vmatmul.msk.f32.gmra.mxu2 %vm629_vm0, %v1981_v49 }
 0x316   : > { %v1473_v17 = vpop.f32.mrf.mxu3 }
 0x317   : > { %v1500_v19 = vadd.f32 %v1473_v17, %v4929_v38  ;;  %v1668_v20 = vpop.f32.mrf.mxu2 }
 0x319   : > { %v5028_v21 = vadd.f32 %v1665_v9, %v1500_v19 }
 0x31b   : > { %3633 = vmatmul.msk.f32.gmra.mxu3 %vm629_vm0, %v1789_v40  ;;  %v1984_v14 = vpop.f32.mrf.mxu1  ;;  %v2155_v41 = vpop.f32.mrf.mxu0 }
 0x31c   : > { %3668 = vmatmul.msk.f32.gmra.mxu2 %vm629_vm0, %v1984_v14 }
 0x31e   : > { %v1476_v6 = vpop.f32.mrf.mxu3 }
 0x31f   : > { %v1501_v24 = vadd.f32 %v1476_v6, %v4942_v52  ;;  %v1671_v26 = vpop.f32.mrf.mxu2 }
 0x321   : > { %v5033_v27 = vadd.f32 %v1668_v20, %v1501_v24 }
 0x323   : > { %3634 = vmatmul.msk.f32.gmra.mxu3 %vm629_vm0, %v1792_v56  ;;  %v2338_v28 = vpop.f32.mrf.mxu1 }
 0x324   : > { %3726 = vmatmul.msk.f32.vlgmr.msra.gmra.mxu2 %vm629_vm0, %v2338_v28 }
 0x326   : > { %v1479_v38 = vpop.f32.mrf.mxu3 }
 0x327   : > { %v1502_v29 = vadd.f32 %v1479_v38, %v4955_v2  ;;  %v1674_v44 = vpop.f32.mrf.mxu2 }
 0x329   : > { %v5038_v31 = vadd.f32 %v1671_v26, %v1502_v29 }
 0x32b   : > { %3692 = vmatmul.msk.f32.vlgmr.msra.gmra.mxu3 %vm629_vm0, %v2146_v16  ;;  %v2341_v33 = vpop.f32.mrf.mxu1 }
 0x32c   : > { %3727 = vmatmul.msk.f32.gmra.mxu2 %vm629_vm0, %v2341_v33 }
 0x32e   : > { %v1482_v52 = vpop.f32.mrf.mxu3 }
 0x32f   : > { %v1503_v35 = vadd.f32 %v1482_v52, %v4968_v25  ;;  %v1677_v37 = vpop.f32.mrf.mxu2  ;;  %v2158_v25 = vpop.f32.mrf.mxu0 }
 0x331   : > { %v5043_v39 = vadd.f32 %v1674_v44, %v1503_v35 }
 0x333   : > { %3693 = vmatmul.msk.f32.gmra.mxu3 %vm629_vm0, %v2149_v22  ;;  %v2344_v36 = vpop.f32.mrf.mxu1 }
 0x334   : > { %3728 = vmatmul.msk.f32.gmra.mxu2 %vm629_vm0, %v2344_v36 }
 0x336   : > { %v1485_v2 = vpop.f32.mrf.mxu3 }
 0x337   : > { %v1504_v45 = vadd.f32 %v1485_v2, %v4981_v32  ;;  %v1680_v47 = vpop.f32.mrf.mxu2  ;;  %v2161_v3 = vpop.f32.mrf.mxu0 }
 0x339   : > { %v5048_v51 = vadd.f32 %v1677_v37, %v1504_v45 }
 0x33b   : > { %3694 = vmatmul.msk.f32.gmra.mxu3 %vm629_vm0, %v2152_v30  ;;  %v2347_v53 = vpop.f32.mrf.mxu1 }
 0x33c   : > { %3729 = vmatmul.msk.f32.gmra.mxu2 %vm629_vm0, %v2347_v53 }
 0x33e   : > { %v1488_v55 = vpop.f32.mrf.mxu3 }
 0x33f   : > { %v1505_v59 = vadd.f32 %v1488_v55, %v4990_v54  ;;  %v5053_v61 = vpop.f32.mrf.mxu2  ;;  %v2164_v54 = vpop.f32.mrf.mxu0 }
 0x341   : > { %v1697_v63 = vadd.f32 %v1680_v47, %v1505_v59 }
 0x343   : > { %3695 = vmatmul.msk.f32.gmra.mxu3 %vm629_vm0, %v2155_v41  ;;  %v2350_v43 = vpop.f32.mrf.mxu1 }
 0x344   : > { %3730 = vmatmul.msk.f32.gmra.mxu2 %vm629_vm0, %v2350_v43 }
 0x346   : > { %v1491_v32 = vpop.f32.mrf.mxu3 }
 0x347   : > { %v5057_v5 = vpop.f32.mrf.mxu2  ;;  %v2167_v13 = vpop.f32.mrf.mxu0  ;;  %v1506_v36 = vadd.f32 %v1491_v32, %v4999_v0 }
 0x34b   : > { %3696 = vmatmul.msk.f32.gmra.mxu3 %vm629_vm0, %v2158_v25  ;;  %v2353_v7 = vpop.f32.mrf.mxu1 }
 0x34c   : > { %3731 = vmatmul.msk.f32.gmra.mxu2 %vm629_vm0, %v2353_v7 }
 0x34e   : > { %v1494_v18 = vpop.f32.mrf.mxu3 }
 0x34f   : > { %v5061_v10 = vpop.f32.mrf.mxu2  ;;  %v2170_v4 = vpop.f32.mrf.mxu0 }
 0x353   : > { %3697 = vmatmul.msk.f32.gmra.mxu3 %vm629_vm0, %v2161_v3  ;;  %v2356_v11 = vpop.f32.mrf.mxu1 }
 0x354   : > { %3732 = vmatmul.msk.f32.gmra.mxu2 %vm629_vm0, %v2356_v11 }
 0x356   : > { %v1848_v57 = vpop.f32.mrf.mxu3 }
 0x357   : > { %v5065_v12 = vpop.f32.mrf.mxu2  ;;  %v2173_v60 = vpop.f32.mrf.mxu0  ;;  %v1881_v3 = vadd.f32 %v1848_v57, %v5013_v42 }
 0x359   : > { %v2073_v7 = vadd.f32 %v5061_v10, %v1881_v3 }
 0x35b   : > { %3698 = vmatmul.msk.f32.gmra.mxu3 %vm629_vm0, %v2164_v54  ;;  %v2359_v40 = vpop.f32.mrf.mxu1 }
 0x35c   : > { %3733 = vmatmul.msk.f32.gmra.mxu2 %vm629_vm0, %v2359_v40 }
 0x35e   : > { %v1851_v23 = vpop.f32.mrf.mxu3 }
 0x35f   : > { %v5069_v15 = vpop.f32.mrf.mxu2  ;;  %v2176_v14 = vpop.f32.mrf.mxu0 }
 0x363   : > { %3699 = vmatmul.msk.f32.gmra.mxu3 %vm629_vm0, %v2167_v13  ;;  %v2362_v46 = vpop.f32.mrf.mxu1 }
 0x364   : > { %3734 = vmatmul.msk.f32.gmra.mxu2 %vm629_vm0, %v2362_v46 }
 0x366   : > { %v1854_v50 = vpop.f32.mrf.mxu3 }
 0x367   : > { %v2049_v56 = vpop.f32.mrf.mxu2  ;;  %v1883_v40 = vadd.f32 %v1854_v50, %v5023_v1 }
 0x369   : > { %v2075_v42 = vadd.f32 %v5069_v15, %v1883_v40  ;;  %v2595_v40 = vld [vmem:[#allocation2 + $0x38] sm:$0xff] }
 0x36b   : > { %3700 = vmatmul.msk.f32.gmra.mxu3 %vm629_vm0, %v2170_v4  ;;  %v2365_v34 = vpop.f32.mrf.mxu1 }
 0x36c   : > { %3735 = vmatmul.msk.f32.gmra.mxu2 %vm629_vm0, %v2365_v34 }
 0x36e   : > { %v1857_v58 = vpop.f32.mrf.mxu3 }
 0x36f   : > { %v1884_v62 = vadd.f32 %v1857_v58, %v5028_v21  ;;  %v2052_v9 = vpop.f32.mrf.mxu2 }
 0x371   : > { %v2076_v49 = vadd.f32 %v2049_v56, %v1884_v62 }
 0x373   : > { %3701 = vmatmul.msk.f32.gmra.mxu3 %vm629_vm0, %v2173_v60  ;;  %v2368_v16 = vpop.f32.mrf.mxu1 }
 0x374   : > { %3736 = vmatmul.msk.f32.gmra.mxu2 %vm629_vm0, %v2368_v16 }
 0x376   : > { %v1860_v17 = vpop.f32.mrf.mxu3 }
 0x377   : > { %v1885_v19 = vadd.f32 %v1860_v17, %v5033_v27  ;;  %v2055_v20 = vpop.f32.mrf.mxu2 }
 0x379   : > { %v5079_v6 = vadd.f32 %v2052_v9, %v1885_v19 }
 0x37b   : > { %3702 = vmatmul.msk.f32.gmra.mxu3 %vm629_vm0, %v2176_v14 }
 0x37e   : > { %v1863_v22 = vpop.f32.mrf.mxu3 }
 0x37f   : > { %v1886_v24 = vadd.f32 %v1863_v22, %v5038_v31  ;;  %v2058_v21 = vpop.f32.mrf.mxu2  ;;  %v1698_v31 = vadd.f32 %v5053_v61, %v1506_v36  ;;  %v1882_v61 = vadd.f32 %v1851_v23, %v5018_v48 }
 0x381   : > { %v5083_v26 = vadd.f32 %v2055_v20, %v1886_v24 }
 0x386   : > { %v1866_v28 = vpop.f32.mrf.mxu3 }
 0x387   : > { %v1887_v38 = vadd.f32 %v1866_v28, %v5043_v39  ;;  %v2061_v29 = vpop.f32.mrf.mxu2  ;;  %v1507_v39 = vadd.f32 %v1494_v18, %v5008_v8  ;;  %v2074_v8 = vadd.f32 %v5065_v12, %v1882_v61 }
 0x389   : > { %v2079_v44 = vadd.f32 %v2058_v21, %v1887_v38  ;;  %v1699_v55 = vadd.f32 %v5057_v5, %v1507_v39 }
 0x38e   : > { %v1869_v30 = vpop.f32.mrf.mxu3 }
 0x38f   : > { %v1888_v27 = vadd.f32 %v1869_v30, %v5048_v51  ;;  %v2064_v33 = vpop.f32.mrf.mxu2 }
 0x391   : > { %v2080_v52 = vadd.f32 %v2061_v29, %v1888_v27  ;;  %v3886_v29 = vld [vmem:[%s5393_s7] ss:$0 sm:$0xff] }
 0x396   : > { %v1872_v35 = vpop.f32.mrf.mxu3 }
 0x397   : > { %v1889_v37 = vadd.f32 %v1872_v35, %v1697_v63  ;;  %v2067_v41 = vpop.f32.mrf.mxu2 }
 0x399   : > { %v2081_v2 = vadd.f32 %v2064_v33, %v1889_v37 }
 0x39e   : > { %v1875_v45 = vpop.f32.mrf.mxu3 }
 0x39f   : > { %v1890_v47 = vadd.f32 %v1875_v45, %v1698_v31  ;;  %v2070_v53 = vpop.f32.mrf.mxu2 }
 0x3a1   : > { %v2082_v25 = vadd.f32 %v2067_v41, %v1890_v47 }
 0x3a6   : > { %v1878_v59 = vpop.f32.mrf.mxu3 }
 0x3a7   : > { %v1891_v51 = vadd.f32 %v1878_v59, %v1699_v55  ;;  %v2424_v43 = vpop.f32.mrf.mxu2 }
 0x3a9   : > { %v2083_v63 = vadd.f32 %v2070_v53, %v1891_v51 }
 0x3ae   : > { %v2232_v0 = vpop.f32.mrf.mxu3 }
 0x3af   : > { %v2265_v32 = vadd.f32 %v2232_v0, %v2073_v7  ;;  %v2427_v54 = vpop.f32.mrf.mxu2 }
 0x3b1   : > { %v5094_v11 = vadd.f32 %v2424_v43, %v2265_v32 }
 0x3b6   : > { %v2235_v18 = vpop.f32.mrf.mxu3 }
 0x3b7   : > { %v2266_v13 = vadd.f32 %v2235_v18, %v2074_v8  ;;  %v2430_v5 = vpop.f32.mrf.mxu2 }
 0x3b9   : > { %v5098_v46 = vadd.f32 %v2427_v54, %v2266_v13  ;;  %v2472_v54 = vadd.f32 %v3886_v29, %v5094_v11  ;;  %v2494_v13 = vld [vmem:[#allocation2] sm:$0xff]  ;;  %v2594_v11 = vld [vmem:[#allocation2 + $0x30] sm:$0xff] }
 0x3bb   : > { %v2473_v0 = vadd.f32 %v3886_v29, %v5098_v46  ;;  %v2483_v18 = vmax.f32 %v2472_v54, 0.0  ;;  %v2530_v46 = vld [vmem:[#allocation2 + $0x10] sm:$0xff] }
 0x3bc   : > { %v3797_v54 = vld [vmem:[%s5394_s8 + $0xf0] sm:$0xff] }
 0x3bd   : > { %v2484_v8 = vmax.f32 %v2473_v0, 0.0  ;;  %v3798_v0 = vld [vmem:[%s5394_s8 + $0xf8] sm:$0xff] }
 0x3be   : > { %v2238_v57 = vpop.f32.mrf.mxu3 }
 0x3bf   : > { %v2267_v10 = vadd.f32 %v2238_v57, %v2075_v42  ;;  %v2433_v4 = vpop.f32.mrf.mxu2  ;;  %v2531_v42 = vld [vmem:[#allocation2 + $0x18] sm:$0xff]  ;;  %v2562_v57 = vld [vmem:[#allocation2 + $0x20] sm:$0xff] }
 0x3c1   : > { %v2459_v56 = vadd.f32 %v2430_v5, %v2267_v10  ;;  %v2495_v5 = vld [vmem:[#allocation2 + $0x8] sm:$0xff] }
 0x3c2   : > { %v2563_v10 = vld [vmem:[#allocation2 + $0x28] sm:$0xff] }
 0x3c6   : > { %v2241_v34 = vpop.f32.mrf.mxu3 }
 0x3c7   : > { %v2268_v58 = vadd.f32 %v2241_v34, %v2076_v49  ;;  %v2436_v48 = vpop.f32.mrf.mxu2 }
 0x3c9   : > { %v2460_v23 = vadd.f32 %v2433_v4, %v2268_v58 }
 0x3cb   : > { %v2475_v43 = vadd.f32 %v3886_v29, %v2460_v23 }
 0x3cd   : > { %v2486_v32 = vmax.f32 %v2475_v43, 0.0  ;;  %v3776_v43 = vld [vmem:[%s5394_s8 + $0x90] sm:$0xff] }
 0x3ce   : > { %v2244_v60 = vpop.f32.mrf.mxu3 }
 0x3cf   : > { %v2439_v62 = vpop.f32.mrf.mxu2  ;;  %v2269_v31 = vadd.f32 %v2244_v60, %v5079_v6 }
 0x3d6   : > { %v2247_v12 = vpop.f32.mrf.mxu3 }
 0x3d7   : > { %v2442_v9 = vpop.f32.mrf.mxu2  ;;  %v2270_v35 = vadd.f32 %v2247_v12, %v5083_v26  ;;  %v2461_v26 = vadd.f32 %v2436_v48, %v2269_v31  ;;  %v3772_v31 = vld [vmem:[%s5432_s3 + $0x10] sm:$0xf] }
 0x3d9   : > { %v2476_v59 = vadd.f32 %v3886_v29, %v2461_v26  ;;  %v3761_v26 = vld [vmem:[%s5394_s8 + $0x48] sm:$0xff] }
 0x3db   : > { %v2487_v7 = vmax.f32 %v2476_v59, 0.0  ;;  %v3777_v59 = vld [vmem:[%s5394_s8 + $0x98] sm:$0xff] }
 0x3de   : > { %v2250_v16 = vpop.f32.mrf.mxu3 }
 0x3df   : > { %v2445_v17 = vpop.f32.mrf.mxu2  ;;  %v2271_v30 = vadd.f32 %v2250_v16, %v2079_v44 }
 0x3e6   : > { %v2253_v19 = vpop.f32.mrf.mxu3 }
 0x3e7   : > { %v2448_v1 = vpop.f32.mrf.mxu2  ;;  %v2272_v28 = vadd.f32 %v2253_v19, %v2080_v52  ;;  %v2462_v52 = vadd.f32 %v2439_v62, %v2270_v35 }
 0x3e9   : > { %v2464_v37 = vadd.f32 %v2445_v17, %v2272_v28  ;;  %v2477_v6 = vadd.f32 %v3886_v29, %v2462_v52  ;;  %v2658_v28 = vld [vmem:[%s5394_s8 + $0x18] sm:$0xff]  ;;  %v3769_v52 = vld [vmem:[%s5394_s8 + $0x70] sm:$0xff] }
 0x3eb   : > { %v2479_v53 = vadd.f32 %v3886_v29, %v2464_v37  ;;  %v2488_v3 = vmax.f32 %v2477_v6, 0.0  ;;  %v3763_v37 = vld [vmem:[%s5394_s8 + $0x58] sm:$0xff]  ;;  %v3760_v6 = vld [vmem:[%s5394_s8 + $0x40] sm:$0xff] }
 0x3ec   : > { %2781 = vmatpush.msrb.mxu1 %v3763_v37  ;;  %v3809_v37 = vld [vmem:[%s5398_s12 + $0x18] sm:$0xff] }
 0x3ed   : > { %v2490_v55 = vmax.f32 %v2479_v53, 0.0  ;;  %v3768_v53 = vld [vmem:[%s5394_s8 + $0x68] sm:$0xff] }
 0x3ee   : > { %v2256_v50 = vpop.f32.mrf.mxu3 }
 0x3ef   : > { %v2451_v20 = vpop.f32.mrf.mxu2  ;;  %v2273_v22 = vadd.f32 %v2256_v50, %v2081_v2  ;;  %v2463_v2 = vadd.f32 %v2442_v9, %v2271_v30  ;;  %v3750_v50 = vld [vmem:[%s5432_s3 + $0x4] sm:$0xf]  ;;  %v3779_v30 = vld [vmem:[%s5432_s3 + $0x14] sm:$0xf] }
 0x3f1   : > { %v2465_v27 = vadd.f32 %v2448_v1, %v2273_v22  ;;  %v2478_v44 = vadd.f32 %v3886_v29, %v2463_v2  ;;  %v3754_v22 = vld [vmem:[%s5394_s8 + $0x30] sm:$0xff]  ;;  %v3786_v2 = vld [vmem:[%s5432_s3 + $0x18] sm:$0xf] }
 0x3f3   : > { %v2480_v45 = vadd.f32 %v3886_v29, %v2465_v27  ;;  %v2489_v51 = vmax.f32 %v2478_v44, 0.0  ;;  %v3793_v27 = vld [vmem:[%s5432_s3 + $0x1c] sm:$0xf]  ;;  %v3767_v44 = vld [vmem:[%s5394_s8 + $0x60] sm:$0xff] }
 0x3f6   : > { %v2259_v14 = vpop.f32.mrf.mxu3 }
 0x3f7   : > { %v2274_v15 = vadd.f32 %v2259_v14, %v2082_v25  ;;  %v2454_v21 = vpop.f32.mrf.mxu2  ;;  %v2491_v25 = vmax.f32 %v2480_v45, 0.0  ;;  %v3765_v14 = vld [vmem:[%s5432_s3 + $0xc] sm:$0xf]  ;;  %v3800_v45 = vld [vmem:[%s5432_s3 + $0x20] sm:$0xf] }
 0x3f9   : > { %v2466_v38 = vadd.f32 %v2451_v20, %v2274_v15  ;;  %v3755_v20 = vld [vmem:[%s5394_s8 + $0x38] sm:$0xff]  ;;  %v2631_v15 = vld [vmem:[%s5432_s3] sm:$0xf] }
 0x3fb   : > { %v2481_v41 = vadd.f32 %v3886_v29, %v2466_v38  ;;  %v2657_v38 = vld [vmem:[%s5394_s8 + $0x10] sm:$0xff] }
 0x3fd   : > { %v5108_v39 = vmax.f32 %v2481_v41, 0.0  ;;  %v3770_v41 = vld [vmem:[%s5394_s8 + $0x78] sm:$0xff] }
 0x3fe   : > { %v2262_v24 = vpop.f32.mrf.mxu3 }
 0x3ff   : > { %v2275_v49 = vadd.f32 %v2262_v24, %v2083_v63  ;;  %v2474_v63 = vadd.f32 %v3886_v29, %v2459_v56  ;;  %v3753_v24 = vld [vmem:[%s5394_s8 + $0x28] sm:$0xff] }
 0x401   : > { %v2467_v33 = vadd.f32 %v2454_v21, %v2275_v49  ;;  %v2485_v61 = vmax.f32 %v2474_v63, 0.0  ;;  %v3752_v21 = vld [vmem:[%s5394_s8 + $0x20] sm:$0xff]  ;;  %v2656_v49 = vld [vmem:[%s5394_s8 + $0x8] sm:$0xff] }
 0x402   : > { %v3781_v63 = vld [vmem:[%s5394_s8 + $0xa0] sm:$0xff] }
 0x403   : > { %v2482_v36 = vadd.f32 %v3886_v29, %v2467_v33  ;;  %v2655_v29 = vld [vmem:[%s5394_s8] sm:$0xff] }
 0x405   : > { %v5106_v47 = vmax.f32 %v2482_v36, 0.0  ;;  %v3758_v36 = vld [vmem:[%s5432_s3 + $0x8] sm:$0xf] }
 0x407   : > { %3737 = vmatpush.msk.msra.mxu0 %vm804_vm1, %v5106_v47  ;;  %3746 = vmatpush.msk.msrb.mxu3 %vm804_vm1, %v5106_v47 }
 0x409   : > { %2512 = vmatpush.msra.mxu0 %v5108_v39  ;;  %2608 = vmatpush.msrb.mxu3 %v5108_v39 }
 0x40b   : > { %2513 = vmatpush.msra.mxu0 %v2491_v25  ;;  %2609 = vmatpush.msrb.mxu3 %v2491_v25 }
 0x40d   : > { %2514 = vmatpush.msra.mxu0 %v2490_v55  ;;  %2610 = vmatpush.msrb.mxu3 %v2490_v55 }
 0x40f   : > { %2515 = vmatpush.msra.mxu0 %v2489_v51  ;;  %2611 = vmatpush.msrb.mxu3 %v2489_v51 }
 0x411   : > { %2516 = vmatpush.msra.mxu0 %v2488_v3  ;;  %2612 = vmatpush.msrb.mxu3 %v2488_v3 }
 0x413   : > { %2517 = vmatpush.msra.mxu0 %v2487_v7  ;;  %2613 = vmatpush.msrb.mxu3 %v2487_v7 }
 0x415   : > { %2518 = vmatpush.msra.mxu0 %v2486_v32  ;;  %2614 = vmatpush.msrb.mxu3 %v2486_v32 }
 0x417   : > { %2519 = vmatpush.msra.mxu0 %v2485_v61  ;;  %2615 = vmatpush.msrb.mxu3 %v2485_v61 }
 0x419   : > { %2520 = vmatpush.msra.mxu0 %v2484_v8  ;;  %2616 = vmatpush.msrb.mxu3 %v2484_v8 }
 0x41b   : > { %2521 = vmatpush.msra.mxu0 %v2483_v18  ;;  %2617 = vmatpush.msrb.mxu3 %v2483_v18 }
 0x41c   : > { %3738 = vmatmul.msk.f32.vlgmr.msra.gmra.mxu0 %vm2496_vm3, %v2494_v13  ;;  %3747 = vmatmul.msk.f32.vlgmr.msrb.gmra.mxu3 %vm2496_vm3, %v2594_v11  ;;  %v3791_v11 = vld [vmem:[%s5394_s8 + $0xd8] sm:$0xff] }
 0x41d   : > { %3740 = vmatpush.msk.msrb.mxu0 %vm804_vm1, %v5106_v47 }
 0x41f   : > { %2544 = vmatpush.msrb.mxu0 %v5108_v39 }
 0x421   : > { %2545 = vmatpush.msrb.mxu0 %v2491_v25 }
 0x423   : > { %2546 = vmatpush.msrb.mxu0 %v2490_v55 }
 0x424   : > { %3739 = vmatmul.msk.f32.gmra.mxu0 %vm2496_vm3, %v2495_v5  ;;  %3748 = vmatmul.msk.f32.gmra.mxu3 %vm2496_vm3, %v2595_v40  ;;  %v3790_v40 = vld [vmem:[%s5394_s8 + $0xd0] sm:$0xff] }
 0x425   : > { %2547 = vmatpush.msrb.mxu0 %v2489_v51 }
 0x427   : > { %2548 = vmatpush.msrb.mxu0 %v2488_v3 }
 0x429   : > { %2549 = vmatpush.msrb.mxu0 %v2487_v7 }
 0x42b   : > { %2550 = vmatpush.msrb.mxu0 %v2486_v32 }
 0x42d   : > { %2551 = vmatpush.msrb.mxu0 %v2485_v61 }
 0x42f   : > { %2552 = vmatpush.msrb.mxu0 %v2484_v8 }
 0x431   : > { %2553 = vmatpush.msrb.mxu0 %v2483_v18 }
 0x432   : > { %3741 = vmatmul.msk.f32.vlgmr.msrb.gmra.mxu0 %vm2496_vm3, %v2530_v46  ;;  %v3789_v46 = vld [vmem:[%s5394_s8 + $0xc8] sm:$0xff] }
 0x433   : > { %3743 = vmatpush.msk.msra.mxu0 %vm804_vm1, %v5106_v47  ;;  %v3762_v47 = vld [vmem:[%s5394_s8 + $0x50] sm:$0xff] }
 0x434   : > { %2782 = vmatpush.msrb.mxu1 %v3762_v47  ;;  %v3815_v47 = vld [vmem:[%s5398_s12 + $0x30] sm:$0xff] }
 0x435   : > { %2576 = vmatpush.msra.mxu0 %v5108_v39 }
 0x436   : > { %2783 = vmatpush.msrb.mxu1 %v3761_v26 }
 0x437   : > { %2577 = vmatpush.msra.mxu0 %v2491_v25  ;;  %v3784_v25 = vld [vmem:[%s5394_s8 + $0xb8] sm:$0xff] }
 0x438   : > { %2784 = vmatpush.msrb.mxu1 %v3760_v6  ;;  %v3260_v6 = vld [vmem:[%s5400_s14 + $0x8] sm:$0xff] }
 0x439   : > { %2578 = vmatpush.msra.mxu0 %v2490_v55  ;;  %v3783_v55 = vld [vmem:[%s5394_s8 + $0xb0] sm:$0xff] }
 0x43a   : > { %3742 = vmatmul.msk.f32.gmra.mxu0 %vm2496_vm3, %v2531_v42  ;;  %2889 = vmatpush.msra.mxu1 %v3777_v59  ;;  %v3788_v42 = vld [vmem:[%s5394_s8 + $0xc0] sm:$0xff] }
 0x43b   : > { %2579 = vmatpush.msra.mxu0 %v2489_v51  ;;  %v3782_v51 = vld [vmem:[%s5394_s8 + $0xa8] sm:$0xff] }
 0x43c   : > { %2890 = vmatpush.msra.mxu1 %v3776_v43 }
 0x43d   : > { %2580 = vmatpush.msra.mxu0 %v2488_v3 }
 0x43f   : > { %2581 = vmatpush.msra.mxu0 %v2487_v7  ;;  %v3775_v7 = vld [vmem:[%s5394_s8 + $0x88] sm:$0xff] }
 0x440   : > { %2891 = vmatpush.msra.mxu1 %v3775_v7 }
 0x441   : > { %2582 = vmatpush.msra.mxu0 %v2486_v32  ;;  %v3774_v32 = vld [vmem:[%s5394_s8 + $0x80] sm:$0xff] }
 0x442   : > { %2892 = vmatpush.msra.mxu1 %v3774_v32 }
 0x443   : > { %2583 = vmatpush.msra.mxu0 %v2485_v61  ;;  %v3796_v61 = vld [vmem:[%s5394_s8 + $0xe8] sm:$0xff] }
 0x445   : > { %2584 = vmatpush.msra.mxu0 %v2484_v8  ;;  %v3795_v8 = vld [vmem:[%s5394_s8 + $0xe0] sm:$0xff] }
 0x447   : > { %2585 = vmatpush.msra.mxu0 %v2483_v18 }
 0x448   : > { %3744 = vmatmul.msk.f32.vlgmr.msra.gmra.mxu0 %vm2496_vm3, %v2562_v57  ;;  %v3805_v57 = vld [vmem:[%s5394_s8 + $0x118] sm:$0xff] }
 0x450   : > { %3745 = vmatmul.msk.f32.gmra.mxu0 %vm2496_vm3, %v2563_v10 }
 0x499   : > { %v2523_v4 = vpop.f32.mrf.mxu0 }
 0x49f   : > { %v2619_v48 = vpop.f32.mrf.mxu3 }
 0x4a1   : > { %v2526_v56 = vpop.f32.mrf.mxu0 }
 0x4a7   : > { %v2622_v60 = vpop.f32.mrf.mxu3 }
 0x4af   : > { %v2555_v34 = vpop.f32.mrf.mxu0 }
 0x4b0   : > { %v2625_v17 = vmax.f32 %v2523_v4, %v2555_v34  ;;  %v3804_v4 = vld [vmem:[%s5394_s8 + $0x110] sm:$0xff]  ;;  %v3802_v34 = vld [vmem:[%s5394_s8 + $0x100] sm:$0xff] }
 0x4b7   : > { %v2558_v58 = vpop.f32.mrf.mxu0 }
 0x4b8   : > { %v2626_v12 = vmax.f32 %v2526_v56, %v2558_v58  ;;  %v3803_v56 = vld [vmem:[%s5394_s8 + $0x108] sm:$0xff] }
 0x4c5   : > { %v2587_v23 = vpop.f32.mrf.mxu0 }
 0x4c6   : > { %v2627_v9 = vmax.f32 %v2587_v23, %v2619_v48 }
 0x4c8   : > { %v2629_v1 = vmax.f32 %v2625_v17, %v2627_v9  ;;  %v3120_v9 = vld [vmem:[%s5396_s10] sm:$0xff] }
 0x4cd   : > { %v2590_v62 = vpop.f32.mrf.mxu0 }
 0x4ce   : > { %v2628_v16 = vmax.f32 %v2590_v62, %v2622_v60  ;;  %v3123_v60 = vld [vmem:[%s5396_s10 + $0x18] sm:$0xff]  ;;  %v3122_v62 = vld [vmem:[%s5396_s10 + $0x10] sm:$0xff] }
 0x4d0   : > { %v2630_v19 = vmax.f32 %v2626_v12, %v2628_v16  ;;  %v3121_v12 = vld [vmem:[%s5396_s10 + $0x8] sm:$0xff] }
 0x4d2   : > { %2649 = vmatpush.msrb.mxu0 %v2630_v19  ;;  %2678 = vmatpush.msra.mxu3 %v2630_v19 }
 0x4d3   : > { %2809 = vmatpush.msrb.mxu2 %v2630_v19 }
 0x4d4   : > { %2650 = vmatpush.msrb.mxu0 %v2629_v1  ;;  %2679 = vmatpush.msra.mxu3 %v2629_v1 }
 0x4d5   : > { %2810 = vmatpush.msrb.mxu2 %v2629_v1  ;;  %3751 = vmatmul.msk.f32.vlgmr.msra.gmra.mxu3 %vm629_vm0, %v3750_v50 }
 0x4d6   : > { %2705 = vmatpush.msra.mxu0 %v3755_v20  ;;  %3766 = vmatmul.msk.f32.vlgmr.msrb.gmra.mxu2 %vm629_vm0, %v3765_v14 }
 0x4d7   : > { %2917 = vmatpush.msra.mxu2 %v2630_v19  ;;  %3749 = vmatmul.msk.f32.vlgmr.msrb.gmra.mxu0 %vm629_vm0, %v2631_v15 }
 0x4d8   : > { %2706 = vmatpush.msra.mxu0 %v3754_v22  ;;  %2728 = vmatpush.msrb.mxu3 %v2658_v28 }
 0x4d9   : > { %2918 = vmatpush.msra.mxu2 %v2629_v1 }
 0x4da   : > { %2707 = vmatpush.msra.mxu0 %v3753_v24  ;;  %2729 = vmatpush.msrb.mxu3 %v2657_v38 }
 0x4db   : > { %3025 = vmatpush.msrb.mxu2 %v2630_v19 }
 0x4dc   : > { %2708 = vmatpush.msra.mxu0 %v3752_v21  ;;  %2730 = vmatpush.msrb.mxu3 %v2656_v49  ;;  %v3887_v49 = vld [vmem:[%s5395_s9] ss:$0 sm:$0xff] }
 0x4dd   : > { %3026 = vmatpush.msrb.mxu2 %v2629_v1 }
 0x4de   : > { %2755 = vmatpush.msrb.mxu0 %v2630_v19  ;;  %2731 = vmatpush.msrb.mxu3 %v2655_v29 }
 0x4df   : > { %3780 = vmatmul.msk.f32.vlgmr.msra.gmra.mxu2 %vm629_vm0, %v3779_v30 }
 0x4e0   : > { %2756 = vmatpush.msrb.mxu0 %v2629_v1  ;;  %2835 = vmatpush.msra.mxu3 %v3770_v41  ;;  %v3151_v41 = vld [vmem:[%s5398_s12] sm:$0xff] }
 0x4e1   : > { %3143 = vmatpush.msra.mxu2 %v3123_v60 }
 0x4e2   : > { %2836 = vmatpush.msra.mxu3 %v3769_v52  ;;  %v3888_v52 = vld [vmem:[%s5397_s11] ss:$0 sm:$0xff] }
 0x4e3   : > { %3144 = vmatpush.msra.mxu2 %v3122_v62 }
 0x4e4   : > { %2837 = vmatpush.msra.mxu3 %v3768_v53 }
 0x4e5   : > { %3145 = vmatpush.msra.mxu2 %v3121_v12 }
 0x4e6   : > { %2838 = vmatpush.msra.mxu3 %v3767_v44 }
 0x4e7   : > { %3794 = vmatmul.msk.f32.vlgmr.msrb.gmra.mxu2 %vm629_vm0, %v3793_v27 }
 0x4e8   : > { %3146 = vmatpush.msra.mxu2 %v3120_v9 }
 0x554   : > { %v2652_v33 = vpop.f32.mrf.mxu0 }
 0x555   : > { %3757 = vmatmul.msk.f32.vlgmr.msrb.gmra.mxu3 %vm2689_vm4, %v2652_v33 }
 0x556   : > { %2943 = vmatpush.msrb.mxu3 %v3784_v25 }
 0x558   : > { %v2681_v35 = vpop.f32.mrf.mxu3  ;;  %2944 = vmatpush.msrb.mxu3 %v3783_v55  ;;  %v3259_v55 = vld [vmem:[%s5400_s14] sm:$0xff] }
 0x559   : > { %3756 = vmatmul.msk.f32.vlgmr.msra.gmra.mxu0 %vm2689_vm4, %v2681_v35  ;;  %v2812_v39 = vpop.f32.mrf.mxu2  ;;  %v3152_v35 = vld [vmem:[%s5398_s12 + $0x8] sm:$0xff] }
 0x55a   : > { %2863 = vmatpush.msra.mxu0 %v2630_v19  ;;  %2945 = vmatpush.msrb.mxu3 %v3782_v51 }
 0x55c   : > { %2864 = vmatpush.msra.mxu0 %v2629_v1  ;;  %2946 = vmatpush.msrb.mxu3 %v3781_v63 }
 0x55d   : > { %3771 = vmatmul.msk.f32.vlgmr.msra.gmra.mxu3 %vm2689_vm4, %v2812_v39 }
 0x55e   : > { %3051 = vmatpush.msra.mxu3 %v3798_v0  ;;  %v3256_v0 = vld [vmem:[%s5399_s13] sm:$0x1] }
 0x560   : > { %3052 = vmatpush.msra.mxu3 %v3797_v54 }
 0x561   : > { %3759 = vmatmul.msk.f32.vlgmr.msrb.gmra.mxu0 %vm629_vm0, %v3758_v36  ;;  %v3813_v36 = vld [vmem:[%s5398_s12 + $0x28] sm:$0xff] }
 0x562   : > { %2971 = vmatpush.msrb.mxu0 %v2630_v19  ;;  %v2920_v3 = vpop.f32.mrf.mxu2  ;;  %3053 = vmatpush.msra.mxu3 %v3796_v61 }
 0x564   : > { %2972 = vmatpush.msrb.mxu0 %v2629_v1  ;;  %3054 = vmatpush.msra.mxu3 %v3795_v8  ;;  %v3286_v8 = vld [vmem:[%s5402_s16] sm:$0xff] }
 0x565   : > { %3785 = vmatmul.msk.f32.vlgmr.msrb.gmra.mxu3 %vm2689_vm4, %v2920_v3 }
 0x566   : > { %3174 = vmatpush.msrb.mxu3 %v3809_v37 }
 0x569   : > { %3773 = vmatmul.msk.f32.vlgmr.msra.gmra.mxu0 %vm629_vm0, %v3772_v31  ;;  %v3816_v31 = vld [vmem:[%s5398_s12 + $0x38] sm:$0xff] }
 0x56a   : > { %3079 = vmatpush.msra.mxu0 %v2630_v19  ;;  %v3028_v18 = vpop.f32.mrf.mxu2  ;;  %3249 = vmatpush.msrb.mxu2 %v3816_v31 }
 0x56c   : > { %3080 = vmatpush.msra.mxu0 %v2629_v1  ;;  %3250 = vmatpush.msrb.mxu2 %v3815_v47 }
 0x56d   : > { %3799 = vmatmul.msk.f32.vlgmr.msra.gmra.mxu3 %vm2689_vm4, %v3028_v18  ;;  %v3261_v18 = vld [vmem:[%s5401_s15] sm:$0x1] }
 0x571   : > { %3787 = vmatmul.msk.f32.vlgmr.msrb.gmra.mxu0 %vm629_vm0, %v3786_v2  ;;  %v3808_v2 = vld [vmem:[%s5398_s12 + $0x10] sm:$0xff] }
 0x572   : > { %3196 = vmatpush.msrb.mxu0 %v3152_v35  ;;  %3175 = vmatpush.msrb.mxu3 %v3808_v2 }
 0x574   : > { %3197 = vmatpush.msrb.mxu0 %v3151_v41  ;;  %3279 = vmatpush.msra.mxu3 %v3260_v6 }
 0x576   : > { %3280 = vmatpush.msra.mxu3 %v3259_v55 }
 0x579   : > { %3801 = vmatmul.msk.f32.vlgmr.msra.gmra.mxu0 %vm629_vm0, %v3800_v45  ;;  %v3812_v45 = vld [vmem:[%s5398_s12 + $0x20] sm:$0xff] }
 0x57a   : > { %3307 = vmatpush.msra.mxu0 %v3286_v8 }
 0x5d6   : > { %v2710_v13 = vpop.f32.mrf.mxu0 }
 0x5d8   : > { %v2733_v23 = vpop.f32.mrf.mxu3 }
 0x5d9   : > { %v2734_v19 = vadd.f32 %v2733_v23, %v2710_v13 }
 0x5de   : > { %v2758_v5 = vpop.f32.mrf.mxu0 }
 0x5df   : > { %3764 = vmatmul.msk.f32.vlgmr.msrb.gmra.mxu1 %vm2689_vm4, %v2758_v5 }
 0x5e0   : > { %2997 = vmatpush.msrb.mxu1 %v3791_v11  ;;  %v2840_v17 = vpop.f32.mrf.mxu3 }
 0x5e2   : > { %2998 = vmatpush.msrb.mxu1 %v3790_v40  ;;  %v3287_v40 = vld [vmem:[%s5403_s17] sm:$0x1] }
 0x5e4   : > { %2999 = vmatpush.msrb.mxu1 %v3789_v46 }
 0x5e6   : > { %v2866_v10 = vpop.f32.mrf.mxu0  ;;  %3000 = vmatpush.msrb.mxu1 %v3788_v42 }
 0x5e7   : > { %3778 = vmatmul.msk.f32.vlgmr.msra.gmra.mxu1 %vm2689_vm4, %v2866_v10 }
 0x5e8   : > { %3105 = vmatpush.msra.mxu1 %v3805_v57  ;;  %v2948_v20 = vpop.f32.mrf.mxu3 }
 0x5ea   : > { %3106 = vmatpush.msra.mxu1 %v3804_v4 }
 0x5ec   : > { %3107 = vmatpush.msra.mxu1 %v3803_v56 }
 0x5ee   : > { %v2974_v58 = vpop.f32.mrf.mxu0  ;;  %3108 = vmatpush.msra.mxu1 %v3802_v34 }
 0x5ef   : > { %3792 = vmatmul.msk.f32.vlgmr.msrb.gmra.mxu1 %vm2689_vm4, %v2974_v58 }
 0x5f0   : > { %v3056_v28 = vpop.f32.mrf.mxu3  ;;  %3222 = vmatpush.msrb.mxu1 %v3813_v36 }
 0x5f2   : > { %3223 = vmatpush.msrb.mxu1 %v3812_v45 }
 0x5f6   : > { %v3082_v48 = vpop.f32.mrf.mxu0 }
 0x5f7   : > { %3806 = vmatmul.msk.f32.vlgmr.msra.gmra.mxu1 %vm2689_vm4, %v3082_v48 }
 0x65c   : > { %v2786_v16 = vpop.f32.mrf.mxu1 }
 0x65d   : > { %v2789_v1 = vadd.f32 %v2786_v16, %v2734_v19 }
 0x65f   : > { %v2843_v14 = vadd.f32 %v2840_v17, %v2789_v1 }
 0x664   : > { %v2894_v50 = vpop.f32.mrf.mxu1 }
 0x665   : > { %v2897_v15 = vadd.f32 %v2894_v50, %v2843_v14 }
 0x667   : > { %v2951_v24 = vadd.f32 %v2948_v20, %v2897_v15 }
 0x66c   : > { %v3002_v22 = vpop.f32.mrf.mxu1 }
 0x66d   : > { %v3005_v21 = vadd.f32 %v3002_v22, %v2951_v24 }
 0x66f   : > { %v3059_v38 = vadd.f32 %v3056_v28, %v3005_v21 }
 0x674   : > { %v3110_v29 = vpop.f32.mrf.mxu1 }
 0x675   : > { %v3113_v30 = vadd.f32 %v3110_v29, %v3059_v38 }
 0x677   : > { %v3118_v27 = vadd.f32 %v3887_v49, %v3113_v30 }
 0x679   : > { %v3119_v33 = vmax.f32 %v3118_v27, 0.0 }
 0x67b   : > { %3807 = vmatmul.msk.f32.vlgmr.msra.gmra.mxu2 %vm2689_vm4, %v3119_v33 }
 0x6fe   : > { %v3148_v53 = vpop.f32.mrf.mxu2 }
 0x6ff   : > { %v3149_v39 = vadd.f32 %v3888_v52, %v3148_v53 }
 0x701   : > { %v3157_v26 = vrot.slane %v3149_v39, 1  ;;  %v3205_v44 = vrot.slane %v3149_v39, 2  ;;  %v3232_v25 = vrot.slane %v3149_v39, 3  ;;  %3811 = vmatmul.msk.f32.vlgmr.msrb.gmra.mxu0 %vm629_vm0, %v3149_v39 }
 0x703   : > { %3810 = vmatmul.msk.f32.vlgmr.msrb.gmra.mxu3 %vm629_vm0, %v3157_v26  ;;  %3814 = vmatmul.msk.f32.vlgmr.msrb.gmra.mxu1 %vm629_vm0, %v3205_v44 }
 0x704   : > { %3817 = vmatmul.msk.f32.vlgmr.msrb.gmra.mxu2 %vm629_vm0, %v3232_v25 }
 0x77e   : > { %v3199_v59 = vpop.f32.mrf.mxu0 }
 0x780   : > { %v3225_v3 = vpop.f32.mrf.mxu1 }
 0x786   : > { %v3177_v51 = vpop.f32.mrf.mxu3 }
 0x787   : > { %v3200_v43 = vadd.f32 %v3199_v59, %v3177_v51  ;;  %v3252_v7 = vpop.f32.mrf.mxu2 }
 0x789   : > { %v3228_v63 = vadd.f32 %v3225_v3, %v3200_v43 }
 0x78b   : > { %v3255_v32 = vadd.f32 %v3252_v7, %v3228_v63 }
 0x78d   : > { %v3257_v54 = vadd.f32 %v3256_v0, %v3255_v32 }
 0x78f   : > { %v3258_v61 = vmax.f32 %v3257_v54, 0.0 }
 0x791   : > { %3818 = vmatmul.msk.f32.vlgmr.msra.gmra.mxu3 %vm629_vm0, %v3258_v61 }
 0x814   : > { %v3282_v13 = vpop.f32.mrf.mxu3 }
 0x815   : > { %v3283_v11 = vadd.f32 %v3282_v13, %v3261_v18 }
 0x817   : > { %v3285_v5 = vmax.f32 %v3283_v11, 0.0 }
 0x819   : > { %3819 = vmatmul.msk.f32.vlgmr.msra.gmra.mxu0 %vm3288_vm5, %v3285_v5 }
 0x896   : > { %v3309_v46 = vpop.f32.mrf.mxu0 }
 0x897   : > { %v3310_v42 = vadd.f32 %v3309_v46, %v3287_v40 }
 0x899   : > { %v3312_v57 = vmax.f32 %v3310_v42, 0.0 }
 0x89b   : > { %v3314_v10 = vsel %vm3313_vm6, %v3312_v57, -inf }
 0x89c   : > { %3315 = vmax.xlane.f32.xlu0 %v3314_v10 }
 0x90f   : > { %v3316_v4 = vpop.xlane.xlu0 %3315 }
 0x910   : > { %v3317_v56 = vsub.f32 %v3312_v57, %v3316_v4 }
 0x912   : > { %v3318_v34 = vmul.f32 1.442695, %v3317_v56 }
 0x914   : > { %3889 = vpow2.f32 %v3318_v34 }
 0x91a   : > { %v3890_v58 = vpop.eup %3889 }
 0x91b   : > { %v3320_v48 = vsel %vm3313_vm6, %v3890_v58, 0.0 }
 0x91c   : > { %3321 = vadd.xlane.f32.xlu0 %v3320_v48 }
 0x98f   : > { %v3322_v23 = vpop.xlane.xlu0 %3321 }
 0x990   : > { %3891 = vrcp.f32 %v3322_v23 }
 0x996   : > { %v3892_v60 = vpop.eup %3891 }
 0x997   : > { %v3324_v62 = vmul.f32 %v3892_v60, %v3890_v58 }
 0x999   : > { %3325 = vst.msk [vmem:[%s601_s25] sm:$0x1] %vm3313_vm6, %v3324_v62 }
 0x99a   : > { %3980 = shalt.err (!%p3977_p8)
}
 0x99b   : > { %3831 = dma.vmem_to_hbm [thread:$0]  (%p4162_p5), %s3338_s18, 16, %s3340_s27, %s3327_s29  }
 0x99c PF: > { %s5434_s24 = sld [smem:[#allocation13_spill]] }
 0x99d   : > { %s5435_s25 = sld [smem:[#allocation11_spill]] }
 0x9a2   : > { %p3848_p9 = scmp.ge.s32.totalorder %s5434_s24, 2 }
 0x9a3   : > { %s3351_s3 = sand.u32 1, %s5435_s25  }
 0x9a4   : > { %p3841_p10 = pnand %p3848_p9, %p4166_p6  ;;  %s3352_s23 = scalar_lea.sflag [#allocation4], %s3351_s3 }
 0x9a6   : > { %p3842_p11 = pneg %p3841_p10 }
 0x9a8   : > { %4006 = dma.done.wait (%p3842_p11), %s3352_s23, 16  }
 0x9a9   : > { %4008 = vsyncadd (%p3842_p11), %s3352_s23, 4294967280  ;;  %s5437_s30 = sld [smem:[#allocation14_spill]]  ;;  %s5440_s27 = smov %s4015_s28 }
 0x9aa   : > { %s5438_s22 = sld [smem:[#allocation12_spill]] }
 0x9ab   : > { %s5439_s29 = sld [smem:[#allocation15_spill]] }
 0x9af   : > { %p30_p12 = scmp.ge.s32.totalorder %s5437_s30, 4  }
 0x9b0   : > { %s5441_s28 = smov %s5438_s22 }
 0x9b1   :  { %32 = sbr.rel (!%p30_p12) target bundleno = 11 (0xb), region = 174 }
 0x9b6   :  { %3357 = vsyncpa [#allocation3], 1 }
 0x9b7   :  { %3359 = vsyncpa [#allocation3 + $0x1], 1 }
 0x9b8   :  { %3360 = vsyncpa [#allocation6], 1 }
 0x9b9   :  { %3361 = vsyncpa [#allocation4], 1 }
 0x9ba   :  { %3363 = vsyncpa [#allocation4 + $0x1], 1 }

</bundles_post_ra>
